<compile_context>
chip_gen: v6e
topology: v6e:2x2x1
jax: 0.10.0
libtpu: 0.0.40
codegen_flags: <defaults>
</compile_context>

<pallas_src>
import functools

import jax
import jax.numpy as jnp
from jax.experimental import pallas as pl
from jax.experimental.pallas import tpu as pltpu


def _round_up(n: int, m: int) -> int:
    return ((n + m - 1) // m) * m


def mlp_kernel(x_ref, w1_ref, b1_ref, w2_ref, b2_ref, w3_ref, b3_ref, o_ref):
    """One batch tile: (TM, len_input) -> (TM, len_output). Weights VMEM-resident bf16."""
    mxu_dtype = w1_ref.dtype  # bf16 MXU operands, f32 accumulation.

    # Layer 1: Linear + ReLU (bias add / ReLU in f32, result stored bf16 for next MXU op)
    h1 = jnp.dot(x_ref[...].astype(mxu_dtype), w1_ref[...],
                 preferred_element_type=jnp.float32)
    h1 = jnp.maximum(h1 + b1_ref[...], 0.0).astype(mxu_dtype)

    # Layer 2: Linear + ReLU
    h2 = jnp.dot(h1, w2_ref[...], preferred_element_type=jnp.float32)
    h2 = jnp.maximum(h2 + b2_ref[...], 0.0).astype(mxu_dtype)

    # Layer 3: Linear (logits, unpadded 16-wide output block)
    out = jnp.dot(h2, w3_ref[...], preferred_element_type=jnp.float32)
    o_ref[...] = (out + b3_ref[...]).astype(o_ref.dtype)


@functools.partial(jax.jit, static_argnames=("block_m",))
def net_forward(x, params, block_m: int = 1024):
    """x: (B, len_input) f32. params: prepared dict (bf16 W as (in, out), f32 b as (1, out))."""
    w1, b1, w2, b2, w3, b3 = (params[k] for k in ("w1", "b1", "w2", "b2", "w3", "b3"))
    B, len_input = x.shape
    hidden = w1.shape[1]
    len_output = w3.shape[1]

    # --- batch tiling: large tiles amortize per-grid-step overhead -----------------
    tm = min(block_m, _round_up(B, 8))
    # Keep >= 2 grid steps when the batch allows, so v7x's 2 TensorCores both get work.
    if _round_up(B, tm) // tm < 2 and B > 8:
        tm = _round_up((B + 1) // 2, 8)
    b_pad = _round_up(B, tm)
    if b_pad != B:
        x = jnp.zeros((b_pad, len_input), x.dtype).at[:B].set(x)
    grid = (b_pad // tm,)

    # Weights/biases: same block for every grid step -> stay resident in VMEM.
    resident = lambda a: pl.BlockSpec(a.shape, lambda i: (0,) * a.ndim)

    # Advisory cost estimate for XLA's scheduler around the custom call.
    flops = 2 * b_pad * (len_input * hidden + hidden * hidden + hidden * len_output)
    bytes_accessed = (
        x.size * x.dtype.itemsize
        + sum(a.size * a.dtype.itemsize for a in (w1, b1, w2, b2, w3, b3))
        + b_pad * len_output * 4
    )

    out = pl.pallas_call(
        mlp_kernel,
        out_shape=jax.ShapeDtypeStruct((b_pad, len_output), jnp.float32),
        grid_spec=pltpu.PrefetchScalarGridSpec(
            num_scalar_prefetch=0,
            grid=grid,
            in_specs=[
                pl.BlockSpec((tm, len_input), lambda i: (i, 0)),  # x: tiled over batch
                resident(w1), resident(b1),
                resident(w2), resident(b2),
                resident(w3), resident(b3),
            ],
            out_specs=pl.BlockSpec((tm, len_output), lambda i: (i, 0)),
        ),
        compiler_params=pltpu.CompilerParams(
            dimension_semantics=("parallel",),  # batch tiles shard across TCs on v7x
        ),
        cost_estimate=pl.CostEstimate(
            flops=flops, transcendentals=0, bytes_accessed=bytes_accessed),
    )(x, w1, b1, w2, b2, w3, b3)

    if b_pad != B:
        out = out[:B]
    return out


def init_params(key, len_input, len_output, hidden_layer_size):
    """Deterministic f32 init mimicking nn.Linear's uniform(-1/sqrt(fan_in), 1/sqrt(fan_in))."""
    ks = jax.random.split(key, 6)

    def linear(kw, kb, fan_in, fan_out):
        bound = 1.0 / jnp.sqrt(fan_in)
        # Stored as (in, out) so the kernel does x @ W (PyTorch stores (out, in)).
        w = jax.random.uniform(kw, (fan_in, fan_out), jnp.float32, -bound, bound)
        b = jax.random.uniform(kb, (1, fan_out), jnp.float32, -bound, bound)
        return w, b

    w1, b1 = linear(ks[0], ks[1], len_input, hidden_layer_size)
    w2, b2 = linear(ks[2], ks[3], hidden_layer_size, hidden_layer_size)
    w3, b3 = linear(ks[4], ks[5], hidden_layer_size, len_output)
    return dict(w1=w1, b1=b1, w2=w2, b2=b2, w3=w3, b3=b3)


def prepare_params(params_f32):
    """One-time weight prep (hoisted out of the forward path): bf16 MXU weights, f32 biases."""
    return dict(
        w1=params_f32["w1"].astype(jnp.bfloat16), b1=params_f32["b1"],
        w2=params_f32["w2"].astype(jnp.bfloat16), b2=params_f32["b2"],
        w3=params_f32["w3"].astype(jnp.bfloat16), b3=params_f32["b3"],
    )


if __name__ == "__main__":
    # Shapes consistent with Net(len_input=32, len_output=16, hidden_layer_size=512).
    batch = 256          # 2 batch tiles of 128 -> exercises the grid / pipelining
    len_input = 32
    len_output = 16
    hidden = 512         # module's default hidden_layer_size

    key = jax.random.PRNGKey(0)
    kx, kp = jax.random.split(key)
    x = jax.random.normal(kx, (batch, len_input), jnp.float32)
    params_f32 = init_params(kp, len_input, len_output, hidden)
    params = prepare_params(params_f32)   # done once, outside the forward path

    out = net_forward(x, params)
    out = jax.block_until_ready(out)
    assert out.shape == (batch, len_output)

    # Reference 1: mirrors the kernel math exactly (bf16 operands, f32 accumulation).
    bf16 = jnp.bfloat16
    h1 = jnp.maximum(
        jnp.dot(x.astype(bf16), params["w1"], preferred_element_type=jnp.float32)
        + params_f32["b1"], 0.0)
    h2 = jnp.maximum(
        jnp.dot(h1.astype(bf16), params["w2"], preferred_element_type=jnp.float32)
        + params_f32["b2"], 0.0)
    ref_bf16 = (jnp.dot(h2.astype(bf16), params["w3"], preferred_element_type=jnp.float32)
                + params_f32["b3"])
    assert jnp.allclose(out, ref_bf16, atol=2e-3, rtol=2e-3)

    # Reference 2: pure f32 math (PyTorch-equivalent); loose tolerance for bf16 MXU inputs.
    h1f = jnp.maximum(x @ params_f32["w1"] + params_f32["b1"], 0.0)
    h2f = jnp.maximum(h1f @ params_f32["w2"] + params_f32["b2"], 0.0)
    ref_f32 = h2f @ params_f32["w3"] + params_f32["b3"]
    assert jnp.allclose(out, ref_f32, atol=3e-2, rtol=3e-2)

    print("KERNEL_OK")
</pallas_src>

<mosaic_0001>
module attributes {stable_mosaic.version = 11 : i64} {
  func.func @mlp_kernel(%arg0: i32, %arg1: memref<128x32xf32, #tpu.memory_space<vmem>>, %arg2: memref<32x512xbf16, #tpu.memory_space<vmem>>, %arg3: memref<1x512xf32, #tpu.memory_space<vmem>>, %arg4: memref<512x512xbf16, #tpu.memory_space<vmem>>, %arg5: memref<1x512xf32, #tpu.memory_space<vmem>>, %arg6: memref<512x16xbf16, #tpu.memory_space<vmem>>, %arg7: memref<1x16xf32, #tpu.memory_space<vmem>>, %arg8: memref<128x16xf32, #tpu.memory_space<vmem>>) attributes {dimension_semantics = [#tpu.dimension_semantics<parallel>], iteration_bounds = array<i64: 2>, scalar_prefetch = 0 : i64, scratch_operands = 0 : i64, tpu.core_type = #tpu.core_type<tc>, window_params = [{transform_indices = @transform_0, window_bounds = array<i64: 128, 32>}, {pipeline_mode = #tpu.pipeline_mode<synchronous>, transform_indices = @transform_1, window_bounds = array<i64: 32, 512>}, {pipeline_mode = #tpu.pipeline_mode<synchronous>, transform_indices = @transform_2, window_bounds = array<i64: 1, 512>}, {pipeline_mode = #tpu.pipeline_mode<synchronous>, transform_indices = @transform_3, window_bounds = array<i64: 512, 512>}, {pipeline_mode = #tpu.pipeline_mode<synchronous>, transform_indices = @transform_4, window_bounds = array<i64: 1, 512>}, {pipeline_mode = #tpu.pipeline_mode<synchronous>, transform_indices = @transform_5, window_bounds = array<i64: 512, 16>}, {pipeline_mode = #tpu.pipeline_mode<synchronous>, transform_indices = @transform_6, window_bounds = array<i64: 1, 16>}, {transform_indices = @transform_7, window_bounds = array<i64: 128, 16>}]} {
    %c0 = arith.constant 0 : index
    %c0_0 = arith.constant 0 : index
    %0 = vector.load %arg1[%c0, %c0_0] : memref<128x32xf32, #tpu.memory_space<vmem>>, vector<128x32xf32>
    %1 = arith.truncf %0 : vector<128x32xf32> to vector<128x32xbf16>
    %c0_1 = arith.constant 0 : index
    %c0_2 = arith.constant 0 : index
    %2 = vector.load %arg2[%c0_1, %c0_2] : memref<32x512xbf16, #tpu.memory_space<vmem>>, vector<32x512xbf16>
    %cst = arith.constant dense<0.000000e+00> : vector<128x512xf32>
    %3 = tpu.matmul %1, %2, %cst {dimension_numbers = #tpu.dot_dimension_numbers<[1], [0], [0], [1], [0, 0, 1, 1], [], []>} : vector<128x32xbf16>, vector<32x512xbf16>, vector<128x512xf32> -> vector<128x512xf32>
    %c0_3 = arith.constant 0 : index
    %c0_4 = arith.constant 0 : index
    %4 = vector.load %arg3[%c0_3, %c0_4] : memref<1x512xf32, #tpu.memory_space<vmem>>, vector<1x512xf32>
    %5 = vector.broadcast %4 : vector<1x512xf32> to vector<128x512xf32>
    %6 = arith.addf %3, %5 : vector<128x512xf32>
    %cst_5 = arith.constant 0.000000e+00 : f32
    %7 = vector.broadcast %cst_5 : f32 to vector<128x512xf32>
    %8 = arith.maximumf %6, %7 : vector<128x512xf32>
    %9 = arith.truncf %8 : vector<128x512xf32> to vector<128x512xbf16>
    %c0_6 = arith.constant 0 : index
    %c0_7 = arith.constant 0 : index
    %10 = vector.load %arg4[%c0_6, %c0_7] : memref<512x512xbf16, #tpu.memory_space<vmem>>, vector<512x512xbf16>
    %cst_8 = arith.constant dense<0.000000e+00> : vector<128x512xf32>
    %11 = tpu.matmul %9, %10, %cst_8 {dimension_numbers = #tpu.dot_dimension_numbers<[1], [0], [0], [1], [0, 0, 1, 1], [], []>} : vector<128x512xbf16>, vector<512x512xbf16>, vector<128x512xf32> -> vector<128x512xf32>
    %c0_9 = arith.constant 0 : index
    %c0_10 = arith.constant 0 : index
    %12 = vector.load %arg5[%c0_9, %c0_10] : memref<1x512xf32, #tpu.memory_space<vmem>>, vector<1x512xf32>
    %13 = vector.broadcast %12 : vector<1x512xf32> to vector<128x512xf32>
    %14 = arith.addf %11, %13 : vector<128x512xf32>
    %cst_11 = arith.constant 0.000000e+00 : f32
    %15 = vector.broadcast %cst_11 : f32 to vector<128x512xf32>
    %16 = arith.maximumf %14, %15 : vector<128x512xf32>
    %17 = arith.truncf %16 : vector<128x512xf32> to vector<128x512xbf16>
    %c0_12 = arith.constant 0 : index
    %c0_13 = arith.constant 0 : index
    %18 = vector.load %arg6[%c0_12, %c0_13] : memref<512x16xbf16, #tpu.memory_space<vmem>>, vector<512x16xbf16>
    %cst_14 = arith.constant dense<0.000000e+00> : vector<128x16xf32>
    %19 = tpu.matmul %17, %18, %cst_14 {dimension_numbers = #tpu.dot_dimension_numbers<[1], [0], [0], [1], [0, 0, 1, 1], [], []>} : vector<128x512xbf16>, vector<512x16xbf16>, vector<128x16xf32> -> vector<128x16xf32>
    %c0_15 = arith.constant 0 : index
    %c0_16 = arith.constant 0 : index
    %20 = vector.load %arg7[%c0_15, %c0_16] : memref<1x16xf32, #tpu.memory_space<vmem>>, vector<1x16xf32>
    %21 = vector.broadcast %20 : vector<1x16xf32> to vector<128x16xf32>
    %22 = arith.addf %19, %21 : vector<128x16xf32>
    %c0_17 = arith.constant 0 : index
    %c0_18 = arith.constant 0 : index
    %23 = vector.load %arg8[%c0_17, %c0_18] : memref<128x16xf32, #tpu.memory_space<vmem>>, vector<128x16xf32>
    tpu.vector_store %arg8[%c0_17, %c0_18], %22 {strides = array<i32>} : memref<128x16xf32, #tpu.memory_space<vmem>>, vector<128x16xf32>,
    return
  }
  func.func @transform_0(%arg0: i32) -> (i32, i32) {
    %c0_i32 = arith.constant 0 : i32
    %c0_i32_0 = arith.constant 0 : i32
    return %arg0, %c0_i32 : i32, i32
  }
  func.func @transform_1(%arg0: i32) -> (i32, i32) {
    %c0_i32 = arith.constant 0 : i32
    %c0_i32_0 = arith.constant 0 : i32
    %c0_i32_1 = arith.constant 0 : i32
    return %c0_i32, %c0_i32_0 : i32, i32
  }
  func.func @transform_2(%arg0: i32) -> (i32, i32) {
    %c0_i32 = arith.constant 0 : i32
    %c0_i32_0 = arith.constant 0 : i32
    %c0_i32_1 = arith.constant 0 : i32
    return %c0_i32, %c0_i32_0 : i32, i32
  }
  func.func @transform_3(%arg0: i32) -> (i32, i32) {
    %c0_i32 = arith.constant 0 : i32
    %c0_i32_0 = arith.constant 0 : i32
    %c0_i32_1 = arith.constant 0 : i32
    return %c0_i32, %c0_i32_0 : i32, i32
  }
  func.func @transform_4(%arg0: i32) -> (i32, i32) {
    %c0_i32 = arith.constant 0 : i32
    %c0_i32_0 = arith.constant 0 : i32
    %c0_i32_1 = arith.constant 0 : i32
    return %c0_i32, %c0_i32_0 : i32, i32
  }
  func.func @transform_5(%arg0: i32) -> (i32, i32) {
    %c0_i32 = arith.constant 0 : i32
    %c0_i32_0 = arith.constant 0 : i32
    %c0_i32_1 = arith.constant 0 : i32
    return %c0_i32, %c0_i32_0 : i32, i32
  }
  func.func @transform_6(%arg0: i32) -> (i32, i32) {
    %c0_i32 = arith.constant 0 : i32
    %c0_i32_0 = arith.constant 0 : i32
    %c0_i32_1 = arith.constant 0 : i32
    return %c0_i32, %c0_i32_0 : i32, i32
  }
  func.func @transform_7(%arg0: i32) -> (i32, i32) {
    %c0_i32 = arith.constant 0 : i32
    %c0_i32_0 = arith.constant 0 : i32
    return %arg0, %c0_i32 : i32, i32
  }
}

</mosaic_0001>

<bundles_post_ra>
// kernel: net_forward.1
= control target key start
LH: loop header
LB: loop body
LE: loop exit
PB: predicated region body
PF: predicated region fallthrough
CT: control target
= control target key end

     0   :  { %12 = vsyncpa [#allocation3], 0  ;;  %s3285_s24 = smov 0   ;;  %s3867_s0 = inlined_call_operand.vmem [shape: f32[256,32], index: 0, kind: input, shape index: {}]   ;;  %s3868_s1 = inlined_call_operand.vmem [shape: bf16[32,512], index: 1, kind: input, shape index: {}]   ;;  %s3869_s2 = inlined_call_operand.vmem [shape: f32[1,512], index: 2, kind: input, shape index: {}]   ;;  %s3870_s3 = inlined_call_operand.hbm [shape: bf16[512,512], index: 3, kind: input, shape index: {}]   ;;  %s3871_s4 = inlined_call_operand.vmem [shape: f32[1,512], index: 4, kind: input, shape index: {}]   ;;  %s3872_s5 = inlined_call_operand.vmem [shape: bf16[512,16], index: 5, kind: input, shape index: {}]   ;;  %s3873_s6 = inlined_call_operand.vmem [shape: f32[1,16], index: 6, kind: input, shape index: {}]   ;;  %s3874_s7 = inlined_call_operand.vmem [shape: f32[256,16], index: 7, kind: output, shape index: {}]  }
   0x1 LB: > { %s2619_s25 = sadd.s32 4294967295, %s3239_s24   ;;  %p2621_p0 = scmp.ge.s32.totalorder %s3239_s24, 1  ;;  %s3239_s24 = sphi %s3285_s24, %s18_s24  }
   0x2   : > { %p201_p1 = scmp.lt.s32.totalorder %s3239_s24, 3  ;;  %s3241_s26 = smov [#allocation2]  }
   0x3   : > { %s219_s27 = sshll.u32 %s3241_s26, 4  ;;  %p3297_p3 = scmp.eq.s32.totalorder %s2619_s25, 0  ;;  %s220_s27 = int_to_ptr.vmem [resolvable:$true] %s219_s27 }
   0x4   : > { %p3293_p2 = pnand %p2621_p0, %p201_p1  ;;  %s3214_s30 = scalar_lea.vmem %s220_s27, 16384 }
   0x5   : > { %p3215_p7 = scmp.ne.s32.totalorder %s220_s27, %s3214_s30  ;;  %p3222_p10 = scmp.lt.s32.totalorder %s220_s27, %s220_s27 }
   0x6   : > { %p2949_p4 = pneg %p3293_p2  ;;  %p3223_p11 = scmp.lt.s32.totalorder %s3214_s30, %s3214_s30 }
   0x8   : > { %p2950_p5 = pnand %p3297_p3, %p2949_p4  ;;  %p3224_p12 = por %p3223_p11, %p3222_p10 }
   0xa   : > { %p3205_p6 = pneg %p2950_p5 }
   0xc   : > { %p3217_p8 = pnand %p3215_p7, %p3205_p6 }
   0xe   : > { %p3218_p9 = pneg %p3217_p8 }
  0x10   : > { %p3225_p13 = pnand %p3224_p12, %p3218_p9 }
  0x12   : > { %3228 = shalt.err (!%p3225_p13)
}
  0x13   : > { %s3242_s8 = smov 256   ;;  %s3243_s9 = smov 16  }
  0x14   : > { %2952 = dma.hbm_to_vmem [thread:$0]  (!%p2950_p5), %s3870_s3, 16384, %s220_s27, [#allocation3], %s3242_s8, %s3242_s8, %s3243_s9  }
  0x15   : > { %253 = sbr.rel (%p3293_p2) target bundleno = 775 (0x307), region = 48 }
  0x1a   : > { %3234 = dma.done.wait (%p3297_p3), [#allocation3], 16384  }
  0x1b   : > { %3236 = vsyncadd (%p3297_p3), [#allocation3], 4294950912  ;;  %s2626_s12 = sshll.u32 %s2619_s25, 4  ;;  %v3244_v0 = vmov 0   ;;  %v2967_v1 = vld [vmem:[%s3868_s1 + $0x24] ss:$16 sps:$4 sm:$0xff]  }
  0x1c   : > { %449 = vmatprep.mubr.bf16.mxu0 %v3244_v0  ;;  %562 = vmatprep.mubr.bf16.mxu1 %v3244_v0  ;;  %p286_p0 = scmp.lt.s32.totalorder %s2626_s12, 31  ;;  %v2969_v2 = vld [vmem:[%s3868_s1 + $0x2c] ss:$16 sps:$4 sm:$0xff]   ;;  %v2971_v3 = vld [vmem:[%s3868_s1 + $0x20] ss:$16 sps:$4 sm:$0xff]   ;;  %vm392_vm0 = vcmask 261120  }
  0x1d   : > { %429 = vmatprep.subr.bf16.mxu0 %v2967_v1  ;;  %v2972_v4 = vld [vmem:[%s3868_s1 + $0x28] ss:$16 sps:$4 sm:$0xff]   ;;  %542 = vmatprep.subr.bf16.mxu1 %v2969_v2  ;;  %v2973_v5 = vld [vmem:[%s3868_s1 + $0x4] ss:$16 sps:$4 sm:$0xff]   ;;  %v2975_v6 = vld [vmem:[%s3868_s1 + $0xc] ss:$16 sps:$4 sm:$0xff]  }
  0x1e   : > { %s3878_s12 = smov (!%p286_p0, %s2626_s12), 31  ;;  %430 = vmatpush1.bf16.msra.mxu0 %v2971_v3  ;;  %543 = vmatpush1.bf16.msra.mxu1 %v2972_v4  ;;  %v2977_v7 = vld [vmem:[%s3868_s1] ss:$16 sps:$4 sm:$0xff]   ;;  %v2978_v8 = vld [vmem:[%s3868_s1 + $0x8] ss:$16 sps:$4 sm:$0xff]   ;;  %vm2534_vm1 = vcmask 130048  }
  0x1f   : > { %s2627_s13 = sshll.u32 %s3878_s12, 3  ;;  %431 = vmatprep.subr.bf16.mxu0 %v2973_v5  ;;  %544 = vmatprep.subr.bf16.mxu1 %v2975_v6  ;;  %v2979_v14 = vld [vmem:[#allocation2 + $0xe0] ss:$16 sps:$4 sm:$0xff]   ;;  %v2981_v15 = vld [vmem:[#allocation2 + $0xe4] ss:$16 sps:$4 sm:$0xff]  }
  0x20   : > { %s3336_s25 = scalar_lea.vmem %s3867_s0, %s2627_s13  ;;  %v2982_v16 = vld [vmem:[#allocation2 + $0x2e0] ss:$16 sps:$4 sm:$0xff]   ;;  %v2984_v17 = vld [vmem:[#allocation2 + $0x2e4] ss:$16 sps:$4 sm:$0xff]   ;;  %s3813_s26 = scalar_lea.vmem %s3874_s7, %s2627_s13 }
  0x21   : > { %v298_v9 = vld [vmem:[%s3336_s25] sm:$0xff]  ;;  %v299_v10 = vld [vmem:[%s3336_s25 + $0x8] sm:$0xff]  ;;  %v300_v12 = vld [vmem:[%s3336_s25 + $0x10] sm:$0xff] }
  0x22   : > { %v314_v11 = vpack.c.bf16 %v299_v10, %v298_v9  ;;  %432 = vmatpush1.bf16.msra.mxu0 %v2977_v7  ;;  %545 = vmatpush1.bf16.msra.mxu1 %v2978_v8  ;;  %v301_v13 = vld [vmem:[%s3336_s25 + $0x18] sm:$0xff]  ;;  %v2985_v18 = vld [vmem:[#allocation2 + $0xc0] ss:$16 sps:$4 sm:$0xff]   ;;  %v2987_v19 = vld [vmem:[#allocation2 + $0xc4] ss:$16 sps:$4 sm:$0xff]  }
  0x23   : > { %1529 = vmatprep.subr.bf16.mxu0 %v2981_v15  ;;  %v315_v20 = vpack.c.bf16 %v301_v13, %v300_v12  ;;  %1642 = vmatprep.subr.bf16.mxu1 %v2984_v17  ;;  %v2990_v21 = vld [vmem:[#allocation2 + $0x2c4] ss:$16 sps:$4 sm:$0xff]   ;;  %v2988_v22 = vld [vmem:[#allocation2 + $0x2c0] ss:$16 sps:$4 sm:$0xff]   ;;  %v303_v28 = vld [vmem:[%s3336_s25 + $0x28] sm:$0xff] }
  0x24   : > { %v2993_v23 = vld [vmem:[#allocation2 + $0xa4] ss:$16 sps:$4 sm:$0xff]   ;;  %v2991_v24 = vld [vmem:[#allocation2 + $0xa0] ss:$16 sps:$4 sm:$0xff]   ;;  %v305_v39 = vld [vmem:[%s3336_s25 + $0x38] sm:$0xff] }
  0x25   : > { %2638 = vmatmul.mubr.msk.bf16.vlgmr.msra.gmra.mxu0 %vm392_vm0, %v314_v11  ;;  %2646 = vmatmul.mubr.msk.bf16.vlgmr.msra.gmra.mxu1 %vm392_vm0, %v314_v11  ;;  %v2996_v25 = vld [vmem:[#allocation2 + $0x2a4] ss:$16 sps:$4 sm:$0xff]   ;;  %v2994_v29 = vld [vmem:[#allocation2 + $0x2a0] ss:$16 sps:$4 sm:$0xff]   ;;  %v307_v50 = vld [vmem:[%s3336_s25 + $0x48] sm:$0xff] }
  0x26   : > { %459 = vmatprep.mubr.bf16.mxu0 %v3244_v0  ;;  %572 = vmatprep.mubr.bf16.mxu1 %v3244_v0  ;;  %v302_v26 = vld [vmem:[%s3336_s25 + $0x20] sm:$0xff]  ;;  %v304_v37 = vld [vmem:[%s3336_s25 + $0x30] sm:$0xff]  ;;  %v309_v60 = vld [vmem:[%s3336_s25 + $0x58] sm:$0xff] }
  0x27   : > { %1530 = vmatpush1.bf16.msra.mxu0 %v2979_v14  ;;  %1643 = vmatpush1.bf16.msra.mxu1 %v2982_v16  ;;  %v2999_v27 = vld [vmem:[#allocation2 + $0x84] ss:$16 sps:$4 sm:$0xff]   ;;  %v2997_v30 = vld [vmem:[#allocation2 + $0x80] ss:$16 sps:$4 sm:$0xff]   ;;  %v316_v32 = vpack.c.bf16 %v303_v28, %v302_v26  ;;  %v317_v43 = vpack.c.bf16 %v305_v39, %v304_v37  ;;  %v311_v9 = vld [vmem:[%s3336_s25 + $0x68] sm:$0xff] }
  0x28   : > { %1531 = vmatprep.subr.bf16.mxu0 %v2987_v19  ;;  %1644 = vmatprep.subr.bf16.mxu1 %v2990_v21  ;;  %v3002_v31 = vld [vmem:[#allocation2 + $0x284] ss:$16 sps:$4 sm:$0xff]   ;;  %v3000_v33 = vld [vmem:[#allocation2 + $0x280] ss:$16 sps:$4 sm:$0xff]   ;;  %v313_v19 = vld [vmem:[%s3336_s25 + $0x78] sm:$0xff] }
  0x29   : > { %v3005_v34 = vld [vmem:[#allocation2 + $0x64] ss:$16 sps:$4 sm:$0xff]   ;;  %v3003_v35 = vld [vmem:[#allocation2 + $0x60] ss:$16 sps:$4 sm:$0xff]  }
  0x2a   : > { %v3008_v36 = vld [vmem:[#allocation2 + $0x264] ss:$16 sps:$4 sm:$0xff]   ;;  %v3006_v40 = vld [vmem:[#allocation2 + $0x260] ss:$16 sps:$4 sm:$0xff]  }
  0x2b   : > { %1532 = vmatpush1.bf16.msra.mxu0 %v2985_v18  ;;  %1645 = vmatpush1.bf16.msra.mxu1 %v2988_v22  ;;  %v3011_v38 = vld [vmem:[#allocation2 + $0x44] ss:$16 sps:$4 sm:$0xff]   ;;  %v3009_v41 = vld [vmem:[#allocation2 + $0x40] ss:$16 sps:$4 sm:$0xff]  }
  0x2c   : > { %1533 = vmatprep.subr.bf16.mxu0 %v2993_v23  ;;  %1646 = vmatprep.subr.bf16.mxu1 %v2996_v25  ;;  %v3014_v42 = vld [vmem:[#allocation2 + $0x244] ss:$16 sps:$4 sm:$0xff]   ;;  %v3012_v44 = vld [vmem:[#allocation2 + $0x240] ss:$16 sps:$4 sm:$0xff]  }
  0x2d   : > { %2639 = vmatmul.mubr.msk.bf16.gmra.mxu0 %vm392_vm0, %v315_v20  ;;  %2647 = vmatmul.mubr.msk.bf16.gmra.mxu1 %vm392_vm0, %v315_v20  ;;  %v3017_v45 = vld [vmem:[#allocation2 + $0x24] ss:$16 sps:$4 sm:$0xff]   ;;  %v3015_v46 = vld [vmem:[#allocation2 + $0x20] ss:$16 sps:$4 sm:$0xff]  }
  0x2e   : > { %469 = vmatprep.mubr.bf16.mxu0 %v3244_v0  ;;  %582 = vmatprep.mubr.bf16.mxu1 %v3244_v0  ;;  %v3020_v47 = vld [vmem:[#allocation2 + $0x224] ss:$16 sps:$4 sm:$0xff]   ;;  %v3018_v51 = vld [vmem:[#allocation2 + $0x220] ss:$16 sps:$4 sm:$0xff]  }
  0x2f   : > { %1534 = vmatpush1.bf16.msra.mxu0 %v2991_v24  ;;  %1647 = vmatpush1.bf16.msra.mxu1 %v2994_v29  ;;  %v306_v48 = vld [vmem:[%s3336_s25 + $0x40] sm:$0xff]  ;;  %v308_v57 = vld [vmem:[%s3336_s25 + $0x50] sm:$0xff] }
  0x30   : > { %1535 = vmatprep.subr.bf16.mxu0 %v2999_v27  ;;  %1648 = vmatprep.subr.bf16.mxu1 %v3002_v31  ;;  %v3023_v49 = vld [vmem:[#allocation2 + $0x4] ss:$16 sps:$4 sm:$0xff]   ;;  %v3021_v52 = vld [vmem:[#allocation2] ss:$16 sps:$4 sm:$0xff]   ;;  %v318_v54 = vpack.c.bf16 %v307_v50, %v306_v48  ;;  %v319_v2 = vpack.c.bf16 %v309_v60, %v308_v57 }
  0x31   : > { %v3026_v53 = vld [vmem:[#allocation2 + $0x204] ss:$16 sps:$4 sm:$0xff]   ;;  %v3024_v55 = vld [vmem:[#allocation2 + $0x200] ss:$16 sps:$4 sm:$0xff]  }
  0x32   : > { %v3029_v56 = vld [vmem:[#allocation2 + $0x1e4] ss:$16 sps:$4 sm:$0xff]   ;;  %v3027_v58 = vld [vmem:[#allocation2 + $0x1e0] ss:$16 sps:$4 sm:$0xff]  }
  0x33   : > { %1536 = vmatpush1.bf16.msra.mxu0 %v2997_v30  ;;  %1649 = vmatpush1.bf16.msra.mxu1 %v3000_v33  ;;  %v3032_v59 = vld [vmem:[#allocation2 + $0x3e4] ss:$16 sps:$4 sm:$0xff]   ;;  %v3030_v62 = vld [vmem:[#allocation2 + $0x3e0] ss:$16 sps:$4 sm:$0xff]   ;;  %v3077_v33 = vld [vmem:[#allocation2 + $0xec] ss:$16 sps:$4 sm:$0xff]  }
  0x34   : > { %1537 = vmatprep.subr.bf16.mxu0 %v3005_v34  ;;  %1650 = vmatprep.subr.bf16.mxu1 %v3008_v36  ;;  %v3035_v61 = vld [vmem:[#allocation2 + $0x1c4] ss:$16 sps:$4 sm:$0xff]   ;;  %v3033_v63 = vld [vmem:[#allocation2 + $0x1c0] ss:$16 sps:$4 sm:$0xff]   ;;  %v3080_v34 = vld [vmem:[#allocation2 + $0x2ec] ss:$16 sps:$4 sm:$0xff]  }
  0x35   : > { %2640 = vmatmul.mubr.msk.bf16.gmra.mxu0 %vm392_vm0, %v316_v32  ;;  %2648 = vmatmul.mubr.msk.bf16.gmra.mxu1 %vm392_vm0, %v316_v32  ;;  %v3038_v1 = vld [vmem:[#allocation2 + $0x3c4] ss:$16 sps:$4 sm:$0xff]   ;;  %v3036_v3 = vld [vmem:[#allocation2 + $0x3c0] ss:$16 sps:$4 sm:$0xff]  }
  0x36   : > { %479 = vmatprep.mubr.bf16.mxu0 %v3244_v0  ;;  %592 = vmatprep.mubr.bf16.mxu1 %v3244_v0  ;;  %v3041_v4 = vld [vmem:[#allocation2 + $0x1a4] ss:$16 sps:$4 sm:$0xff]   ;;  %v3039_v5 = vld [vmem:[#allocation2 + $0x1a0] ss:$16 sps:$4 sm:$0xff]  }
  0x37   : > { %1538 = vmatpush1.bf16.msra.mxu0 %v3003_v35  ;;  %1651 = vmatpush1.bf16.msra.mxu1 %v3006_v40  ;;  %v3044_v6 = vld [vmem:[#allocation2 + $0x3a4] ss:$16 sps:$4 sm:$0xff]   ;;  %v3042_v10 = vld [vmem:[#allocation2 + $0x3a0] ss:$16 sps:$4 sm:$0xff]   ;;  %v332_v35 = vlaneseq }
  0x38   : > { %1539 = vmatprep.subr.bf16.mxu0 %v3011_v38  ;;  %1652 = vmatprep.subr.bf16.mxu1 %v3014_v42  ;;  %v3047_v7 = vld [vmem:[#allocation2 + $0x184] ss:$16 sps:$4 sm:$0xff]   ;;  %v3045_v11 = vld [vmem:[#allocation2 + $0x180] ss:$16 sps:$4 sm:$0xff]  }
  0x39   : > { %v310_v8 = vld [vmem:[%s3336_s25 + $0x60] sm:$0xff]  ;;  %v312_v18 = vld [vmem:[%s3336_s25 + $0x70] sm:$0xff]  ;;  %v3396_v36 = vshrl.u32 %v332_v35, 7 }
  0x3a   : > { %v3050_v12 = vld [vmem:[#allocation2 + $0x384] ss:$16 sps:$4 sm:$0xff]   ;;  %v320_v13 = vpack.c.bf16 %v311_v9, %v310_v8  ;;  %v3048_v14 = vld [vmem:[#allocation2 + $0x380] ss:$16 sps:$4 sm:$0xff]   ;;  %v321_v21 = vpack.c.bf16 %v313_v19, %v312_v18  ;;  %v3083_v19 = vld [vmem:[#allocation2 + $0xcc] ss:$16 sps:$4 sm:$0xff]  }
  0x3b   : > { %1540 = vmatpush1.bf16.msra.mxu0 %v3009_v41  ;;  %1653 = vmatpush1.bf16.msra.mxu1 %v3012_v44  ;;  %v3053_v15 = vld [vmem:[#allocation2 + $0x164] ss:$16 sps:$4 sm:$0xff]   ;;  %v3051_v16 = vld [vmem:[#allocation2 + $0x160] ss:$16 sps:$4 sm:$0xff]   ;;  %v338_v37 = vsub.s32 1, %v3396_v36  ;;  %v346_v38 = vsub.s32 3, %v3396_v36 }
  0x3c   : > { %1541 = vmatprep.subr.bf16.mxu0 %v3017_v45  ;;  %1654 = vmatprep.subr.bf16.mxu1 %v3020_v47  ;;  %v3056_v17 = vld [vmem:[#allocation2 + $0x364] ss:$16 sps:$4 sm:$0xff]   ;;  %v3054_v20 = vld [vmem:[#allocation2 + $0x360] ss:$16 sps:$4 sm:$0xff]   ;;  %v334_v39 = vsub.s32 0, %v3396_v36  ;;  %v342_v40 = vsub.s32 2, %v3396_v36 }
  0x3d   : > { %2641 = vmatmul.mubr.msk.bf16.gmra.mxu0 %vm392_vm0, %v317_v43  ;;  %2649 = vmatmul.mubr.msk.bf16.gmra.mxu1 %vm392_vm0, %v317_v43  ;;  %v3059_v22 = vld [vmem:[#allocation2 + $0x144] ss:$16 sps:$4 sm:$0xff]   ;;  %v3057_v24 = vld [vmem:[#allocation2 + $0x140] ss:$16 sps:$4 sm:$0xff]  }
  0x3e   : > { %489 = vmatprep.mubr.bf16.mxu0 %v3244_v0  ;;  %602 = vmatprep.mubr.bf16.mxu1 %v3244_v0  ;;  %v3062_v23 = vld [vmem:[#allocation2 + $0x344] ss:$16 sps:$4 sm:$0xff]   ;;  %v3060_v25 = vld [vmem:[#allocation2 + $0x340] ss:$16 sps:$4 sm:$0xff]  }
  0x3f   : > { %1542 = vmatpush1.bf16.msra.mxu0 %v3015_v46  ;;  %1655 = vmatpush1.bf16.msra.mxu1 %v3018_v51  ;;  %v3065_v26 = vld [vmem:[#allocation2 + $0x124] ss:$16 sps:$4 sm:$0xff]   ;;  %v3063_v27 = vld [vmem:[#allocation2 + $0x120] ss:$16 sps:$4 sm:$0xff]  }
  0x40   : > { %1543 = vmatprep.subr.bf16.mxu0 %v3023_v49  ;;  %1656 = vmatprep.subr.bf16.mxu1 %v3026_v53  ;;  %v3066_v28 = vld [vmem:[#allocation2 + $0x320] ss:$16 sps:$4 sm:$0xff]   ;;  %v3071_v29 = vld [vmem:[#allocation2 + $0x104] ss:$16 sps:$4 sm:$0xff]  }
  0x41   : > { %v3074_v30 = vld [vmem:[#allocation2 + $0x304] ss:$16 sps:$4 sm:$0xff]   ;;  %v3069_v31 = vld [vmem:[#allocation2 + $0x100] ss:$16 sps:$4 sm:$0xff]  }
  0x42   : > { %v3072_v32 = vld [vmem:[#allocation2 + $0x300] ss:$16 sps:$4 sm:$0xff]  }
  0x43   : > { %1544 = vmatpush1.bf16.msra.mxu0 %v3021_v52  ;;  %1657 = vmatpush1.bf16.msra.mxu1 %v3024_v55  ;;  %v330_v41 = vld [vmem:[%s3869_s2] sm:$0xf] }
  0x44   : > { %1545 = vmatprep.subr.bf16.mxu0 %v3029_v56  ;;  %1658 = vmatprep.subr.bf16.mxu1 %v3032_v59  ;;  %v3407_v44 = vrot.slane %v330_v41, %v338_v37  ;;  %v3411_v45 = vrot.slane %v330_v41, %v346_v38  ;;  %v3415_v46 = vrot.slane %v330_v41, %v334_v39 }
  0x45   : > { %2642 = vmatmul.mubr.msk.bf16.gmra.mxu0 %vm392_vm0, %v318_v54  ;;  %2650 = vmatmul.mubr.msk.bf16.gmra.mxu1 %vm392_vm0, %v318_v54  ;;  %v3419_v47 = vrot.slane %v330_v41, %v342_v40  ;;  %v3089_v41 = vld [vmem:[#allocation2 + $0xac] ss:$16 sps:$4 sm:$0xff]  }
  0x46   : > { %499 = vmatprep.mubr.bf16.mxu0 %v3244_v0  ;;  %612 = vmatprep.mubr.bf16.mxu1 %v3244_v0 }
  0x47   : > { %1546 = vmatpush2.bf16.msra.mxu0 %v3027_v58  ;;  %1659 = vmatpush2.bf16.msra.mxu1 %v3030_v62 }
  0x48   : > { %1547 = vmatprep.subr.bf16.mxu0 %v3035_v61  ;;  %1660 = vmatprep.subr.bf16.mxu1 %v3038_v1 }
  0x4b   : > { %1548 = vmatpush2.bf16.msra.mxu0 %v3033_v63  ;;  %1661 = vmatpush2.bf16.msra.mxu1 %v3036_v3 }
  0x4c   : > { %1549 = vmatprep.subr.bf16.mxu0 %v3041_v4  ;;  %1662 = vmatprep.subr.bf16.mxu1 %v3044_v6 }
  0x4d   : > { %2643 = vmatmul.mubr.msk.bf16.gmra.mxu0 %vm392_vm0, %v319_v2  ;;  %2651 = vmatmul.mubr.msk.bf16.gmra.mxu1 %vm392_vm0, %v319_v2 }
  0x4e   : > { %509 = vmatprep.mubr.bf16.mxu0 %v3244_v0  ;;  %622 = vmatprep.mubr.bf16.mxu1 %v3244_v0 }
  0x4f   : > { %1550 = vmatpush2.bf16.msra.mxu0 %v3039_v5  ;;  %1663 = vmatpush2.bf16.msra.mxu1 %v3042_v10 }
  0x50   : > { %1551 = vmatprep.subr.bf16.mxu0 %v3047_v7  ;;  %1664 = vmatprep.subr.bf16.mxu1 %v3050_v12 }
  0x53   : > { %1552 = vmatpush2.bf16.msra.mxu0 %v3045_v11  ;;  %1665 = vmatpush2.bf16.msra.mxu1 %v3048_v14  ;;  %v3078_v14 = vld [vmem:[#allocation2 + $0x2e8] ss:$16 sps:$4 sm:$0xff]  }
  0x54   : > { %1553 = vmatprep.subr.bf16.mxu0 %v3053_v15  ;;  %1666 = vmatprep.subr.bf16.mxu1 %v3056_v17 }
  0x55   : > { %2644 = vmatmul.mubr.msk.bf16.gmra.mxu0 %vm392_vm0, %v320_v13  ;;  %2652 = vmatmul.mubr.msk.bf16.gmra.mxu1 %vm392_vm0, %v320_v13  ;;  %v3075_v13 = vld [vmem:[#allocation2 + $0xe8] ss:$16 sps:$4 sm:$0xff]  }
  0x56   : > { %519 = vmatprep.mubr.bf16.mxu0 %v3244_v0  ;;  %632 = vmatprep.mubr.bf16.mxu1 %v3244_v0  ;;  %v3068_v0 = vld [vmem:[#allocation2 + $0x324] ss:$16 sps:$4 sm:$0xff]  }
  0x57   : > { %1554 = vmatpush2.bf16.msra.mxu0 %v3051_v16  ;;  %1667 = vmatpush2.bf16.msra.mxu1 %v3054_v20  ;;  %v3086_v20 = vld [vmem:[#allocation2 + $0x2cc] ss:$16 sps:$4 sm:$0xff]  }
  0x58   : > { %1555 = vmatprep.subr.bf16.mxu0 %v3059_v22  ;;  %1668 = vmatprep.subr.bf16.mxu1 %v3062_v23 }
  0x5b   : > { %1556 = vmatpush2.bf16.msra.mxu0 %v3057_v24  ;;  %1669 = vmatpush2.bf16.msra.mxu1 %v3060_v25 }
  0x5c   : > { %1557 = vmatprep.subr.bf16.mxu0 %v3065_v26  ;;  %1670 = vmatprep.subr.bf16.mxu1 %v3068_v0 }
  0x5d   : > { %2645 = vmatmul.mubr.msk.bf16.gmra.mxu0 %vm392_vm0, %v321_v21  ;;  %2653 = vmatmul.mubr.msk.bf16.gmra.mxu1 %vm392_vm0, %v321_v21 }
  0x5f   : > { %1558 = vmatpush2.bf16.msra.mxu0 %v3063_v27  ;;  %1671 = vmatpush2.bf16.msra.mxu1 %v3066_v28 }
  0x60   : > { %1559 = vmatprep.subr.bf16.mxu0 %v3071_v29  ;;  %1672 = vmatprep.subr.bf16.mxu1 %v3074_v30  ;;  %v3081_v30 = vld [vmem:[#allocation2 + $0xc8] ss:$16 sps:$4 sm:$0xff]  }
  0x63   : > { %1560 = vmatpush2.bf16.msra.mxu0 %v3069_v31  ;;  %1673 = vmatpush2.bf16.msra.mxu1 %v3072_v32  ;;  %v3084_v31 = vld [vmem:[#allocation2 + $0x2c8] ss:$16 sps:$4 sm:$0xff]  }
  0x64   : > { %1755 = vmatprep.subr.bf16.mxu0 %v3077_v33  ;;  %1868 = vmatprep.subr.bf16.mxu1 %v3080_v34 }
  0xe5   : > { %v451_v42 = vpop.f32.mrf.mxu0  ;;  %v564_v43 = vpop.f32.mrf.mxu1 }
  0xe6   : > { %v452_v56 = vadd.f32 %v451_v42, %v3415_v46  ;;  %v565_v57 = vadd.f32 %v564_v43, %v3419_v47  ;;  %v3092_v42 = vld [vmem:[#allocation2 + $0x2ac] ss:$16 sps:$4 sm:$0xff]  }
  0xe7   : > { %v453_v48 = vpop.f32.mrf.mxu0  ;;  %v566_v49 = vpop.f32.mrf.mxu1 }
  0xe8   : > { %v454_v52 = vadd.f32 %v453_v48, %v3407_v44  ;;  %v567_v53 = vadd.f32 %v566_v49, %v3411_v45  ;;  %v643_v7 = vmax.f32 %v452_v56, 0.0  ;;  %v645_v8 = vmax.f32 %v565_v57, 0.0  ;;  %v3087_v56 = vld [vmem:[#allocation2 + $0xa8] ss:$16 sps:$4 sm:$0xff]  }
  0xe9   : > { %v455_v50 = vpop.f32.mrf.mxu0  ;;  %v568_v51 = vpop.f32.mrf.mxu1 }
  0xea   : > { %v456_v54 = vadd.f32 %v455_v50, %v3415_v46  ;;  %v569_v55 = vadd.f32 %v568_v51, %v3419_v47  ;;  %v644_v3 = vmax.f32 %v454_v52, 0.0  ;;  %v646_v4 = vmax.f32 %v567_v53, 0.0 }
  0xeb   : > { %v457_v58 = vpop.f32.mrf.mxu0  ;;  %v570_v59 = vpop.f32.mrf.mxu1 }
  0xec   : > { %v458_v60 = vadd.f32 %v457_v58, %v3407_v44  ;;  %v571_v61 = vadd.f32 %v570_v59, %v3411_v45  ;;  %v647_v62 = vmax.f32 %v456_v54, 0.0  ;;  %v649_v63 = vmax.f32 %v569_v55, 0.0 }
  0xed   : > { %v461_v1 = vpop.f32.mrf.mxu0  ;;  %v574_v2 = vpop.f32.mrf.mxu1 }
  0xee   : > { %v648_v5 = vmax.f32 %v458_v60, 0.0  ;;  %v650_v6 = vmax.f32 %v571_v61, 0.0  ;;  %v3433_v15 = vpack.c.bf16 %v647_v62, %v643_v7  ;;  %v3435_v16 = vpack.c.bf16 %v649_v63, %v645_v8  ;;  %v3090_v62 = vld [vmem:[#allocation2 + $0x2a8] ss:$16 sps:$4 sm:$0xff]   ;;  %v3095_v63 = vld [vmem:[#allocation2 + $0x8c] ss:$16 sps:$4 sm:$0xff]  }
  0xef   : > { %v463_v9 = vpop.f32.mrf.mxu0  ;;  %v576_v10 = vpop.f32.mrf.mxu1  ;;  %v462_v24 = vadd.f32 %v461_v1, %v3415_v46  ;;  %v575_v25 = vadd.f32 %v574_v2, %v3419_v47 }
  0xf0   : > { %v3429_v11 = vpack.c.bf16 %v648_v5, %v644_v3  ;;  %v3431_v12 = vpack.c.bf16 %v650_v6, %v646_v4  ;;  %v464_v21 = vadd.f32 %v463_v9, %v3407_v44  ;;  %v577_v26 = vadd.f32 %v576_v10, %v3411_v45  ;;  %v3098_v5 = vld [vmem:[#allocation2 + $0x28c] ss:$16 sps:$4 sm:$0xff]  }
  0xf1   : > { %v465_v17 = vpop.f32.mrf.mxu0  ;;  %v578_v18 = vpop.f32.mrf.mxu1  ;;  %v651_v50 = vmax.f32 %v462_v24, 0.0  ;;  %v653_v51 = vmax.f32 %v575_v25, 0.0 }
  0xf2   : > { %v466_v22 = vadd.f32 %v465_v17, %v3415_v46  ;;  %v579_v23 = vadd.f32 %v578_v18, %v3419_v47  ;;  %1561 = vmatprep.mubr.bf16.mxu0 %v3429_v11  ;;  %1674 = vmatprep.mubr.bf16.mxu1 %v3431_v12  ;;  %v652_v43 = vmax.f32 %v464_v21, 0.0  ;;  %v654_v52 = vmax.f32 %v577_v26, 0.0  ;;  %v3096_v21 = vld [vmem:[#allocation2 + $0x288] ss:$16 sps:$4 sm:$0xff]  }
  0xf3   : > { %v467_v0 = vpop.f32.mrf.mxu0  ;;  %v580_v27 = vpop.f32.mrf.mxu1  ;;  %1562 = vmatmul.mubr.bf16.vlgmr.msra.gmra.mxu0 %v3433_v15  ;;  %1675 = vmatmul.mubr.bf16.vlgmr.msra.gmra.mxu1 %v3435_v16 }
  0xf4   : > { %v468_v28 = vadd.f32 %v467_v0, %v3407_v44  ;;  %v581_v29 = vadd.f32 %v580_v27, %v3411_v45  ;;  %1756 = vmatpush1.bf16.msra.mxu0 %v3075_v13  ;;  %1869 = vmatpush1.bf16.msra.mxu1 %v3078_v14  ;;  %v655_v32 = vmax.f32 %v466_v22, 0.0  ;;  %v657_v33 = vmax.f32 %v579_v23, 0.0  ;;  %v3093_v14 = vld [vmem:[#allocation2 + $0x88] ss:$16 sps:$4 sm:$0xff]   ;;  %v3101_v22 = vld [vmem:[#allocation2 + $0x6c] ss:$16 sps:$4 sm:$0xff]  }
  0xf5   : > { %v471_v34 = vpop.f32.mrf.mxu0  ;;  %v584_v35 = vpop.f32.mrf.mxu1  ;;  %1757 = vmatprep.subr.bf16.mxu0 %v3083_v19  ;;  %1870 = vmatprep.subr.bf16.mxu1 %v3086_v20 }
  0xf6   : > { %v656_v48 = vmax.f32 %v468_v28, 0.0  ;;  %v658_v49 = vmax.f32 %v581_v29, 0.0  ;;  %v3451_v57 = vpack.c.bf16 %v655_v32, %v651_v50  ;;  %v3453_v58 = vpack.c.bf16 %v657_v33, %v653_v51  ;;  %v3099_v33 = vld [vmem:[#allocation2 + $0x68] ss:$16 sps:$4 sm:$0xff]  }
  0xf7   : > { %v473_v53 = vpop.f32.mrf.mxu0  ;;  %v586_v54 = vpop.f32.mrf.mxu1  ;;  %v472_v6 = vadd.f32 %v471_v34, %v3415_v46  ;;  %v585_v7 = vadd.f32 %v584_v35, %v3419_v47 }
  0xf8   : > { %1758 = vmatpush1.bf16.msra.mxu0 %v3081_v30  ;;  %1871 = vmatpush1.bf16.msra.mxu1 %v3084_v31  ;;  %v3449_v55 = vpack.c.bf16 %v656_v48, %v652_v43  ;;  %v3455_v61 = vpack.c.bf16 %v658_v49, %v654_v52  ;;  %v474_v1 = vadd.f32 %v473_v53, %v3407_v44  ;;  %v3104_v30 = vld [vmem:[#allocation2 + $0x26c] ss:$16 sps:$4 sm:$0xff]   ;;  %v3102_v48 = vld [vmem:[#allocation2 + $0x268] ss:$16 sps:$4 sm:$0xff]  }
  0xf9   : > { %v475_v59 = vpop.f32.mrf.mxu0  ;;  %v588_v60 = vpop.f32.mrf.mxu1  ;;  %1759 = vmatprep.subr.bf16.mxu0 %v3089_v41  ;;  %1872 = vmatprep.subr.bf16.mxu1 %v3092_v42  ;;  %v587_v2 = vadd.f32 %v586_v54, %v3411_v45  ;;  %v659_v0 = vmax.f32 %v472_v6, 0.0  ;;  %v661_v27 = vmax.f32 %v585_v7, 0.0  ;;  %v3107_v49 = vld [vmem:[#allocation2 + $0x4c] ss:$16 sps:$4 sm:$0xff]   ;;  %v3108_v6 = vld [vmem:[#allocation2 + $0x248] ss:$16 sps:$4 sm:$0xff]  }
  0xfa   : > { %v476_v3 = vadd.f32 %v475_v59, %v3415_v46  ;;  %v589_v4 = vadd.f32 %v588_v60, %v3419_v47  ;;  %1571 = vmatprep.mubr.bf16.mxu0 %v3449_v55  ;;  %1684 = vmatprep.mubr.bf16.mxu1 %v3455_v61  ;;  %v660_v23 = vmax.f32 %v474_v1, 0.0  ;;  %v3110_v53 = vld [vmem:[#allocation2 + $0x24c] ss:$16 sps:$4 sm:$0xff]   ;;  %v3105_v1 = vld [vmem:[#allocation2 + $0x48] ss:$16 sps:$4 sm:$0xff]  }
  0xfb   : > { %v477_v8 = vpop.f32.mrf.mxu0  ;;  %v590_v9 = vpop.f32.mrf.mxu1  ;;  %1572 = vmatmul.mubr.bf16.gmra.mxu0 %v3451_v57  ;;  %1685 = vmatmul.mubr.bf16.gmra.mxu1 %v3453_v58  ;;  %v662_v24 = vmax.f32 %v587_v2, 0.0  ;;  %v3113_v7 = vld [vmem:[#allocation2 + $0x2c] ss:$16 sps:$4 sm:$0xff]  }
  0xfc   : > { %v478_v10 = vadd.f32 %v477_v8, %v3407_v44  ;;  %v591_v13 = vadd.f32 %v590_v9, %v3411_v45  ;;  %1760 = vmatpush1.bf16.msra.mxu0 %v3087_v56  ;;  %v663_v17 = vmax.f32 %v476_v3, 0.0  ;;  %v665_v18 = vmax.f32 %v589_v4, 0.0  ;;  %1873 = vmatpush1.bf16.msra.mxu1 %v3090_v62 }
  0xfd   : > { %v481_v19 = vpop.f32.mrf.mxu0  ;;  %v594_v20 = vpop.f32.mrf.mxu1  ;;  %1761 = vmatprep.subr.bf16.mxu0 %v3095_v63  ;;  %1874 = vmatprep.subr.bf16.mxu1 %v3098_v5 }
  0xfe   : > { %v664_v25 = vmax.f32 %v478_v10, 0.0  ;;  %v666_v26 = vmax.f32 %v591_v13, 0.0  ;;  %v3473_v34 = vpack.c.bf16 %v663_v17, %v659_v0  ;;  %v3475_v35 = vpack.c.bf16 %v665_v18, %v661_v27 }
  0xff   : > { %v483_v28 = vpop.f32.mrf.mxu0  ;;  %v596_v29 = vpop.f32.mrf.mxu1  ;;  %v482_v54 = vadd.f32 %v481_v19, %v3415_v46  ;;  %v595_v56 = vadd.f32 %v594_v20, %v3419_v47  ;;  %v3116_v20 = vld [vmem:[#allocation2 + $0x22c] ss:$16 sps:$4 sm:$0xff]  }
 0x100   : > { %1762 = vmatpush1.bf16.msra.mxu0 %v3093_v14  ;;  %v3469_v31 = vpack.c.bf16 %v664_v25, %v660_v23  ;;  %v3471_v32 = vpack.c.bf16 %v666_v26, %v662_v24  ;;  %v484_v41 = vadd.f32 %v483_v28, %v3407_v44  ;;  %1875 = vmatpush1.bf16.msra.mxu1 %v3096_v21  ;;  %v3111_v23 = vld [vmem:[#allocation2 + $0x28] ss:$16 sps:$4 sm:$0xff]  }
 0x101   : > { %v485_v42 = vpop.f32.mrf.mxu0  ;;  %v598_v43 = vpop.f32.mrf.mxu1  ;;  %1763 = vmatprep.subr.bf16.mxu0 %v3101_v22  ;;  %v597_v50 = vadd.f32 %v596_v29, %v3411_v45  ;;  %1876 = vmatprep.subr.bf16.mxu1 %v3104_v30  ;;  %v667_v14 = vmax.f32 %v482_v54, 0.0  ;;  %v669_v17 = vmax.f32 %v595_v56, 0.0  ;;  %v3114_v28 = vld [vmem:[#allocation2 + $0x228] ss:$16 sps:$4 sm:$0xff]   ;;  %v3119_v29 = vld [vmem:[#allocation2 + $0xc] ss:$16 sps:$4 sm:$0xff]  }
 0x102   : > { %v486_v51 = vadd.f32 %v485_v42, %v3415_v46  ;;  %v599_v52 = vadd.f32 %v598_v43, %v3419_v47  ;;  %1581 = vmatprep.mubr.bf16.mxu0 %v3469_v31  ;;  %1694 = vmatprep.mubr.bf16.mxu1 %v3471_v32  ;;  %v668_v8 = vmax.f32 %v484_v41, 0.0  ;;  %v3122_v42 = vld [vmem:[#allocation2 + $0x20c] ss:$16 sps:$4 sm:$0xff]  }
 0x103   : > { %v487_v59 = vpop.f32.mrf.mxu0  ;;  %v600_v60 = vpop.f32.mrf.mxu1  ;;  %1582 = vmatmul.mubr.bf16.gmra.mxu0 %v3473_v34  ;;  %1695 = vmatmul.mubr.bf16.gmra.mxu1 %v3475_v35  ;;  %v670_v9 = vmax.f32 %v597_v50, 0.0 }
 0x104   : > { %v488_v62 = vadd.f32 %v487_v59, %v3407_v44  ;;  %v601_v63 = vadd.f32 %v600_v60, %v3411_v45  ;;  %1764 = vmatpush1.bf16.msra.mxu0 %v3099_v33  ;;  %v671_v2 = vmax.f32 %v486_v51, 0.0  ;;  %v673_v3 = vmax.f32 %v599_v52, 0.0  ;;  %1877 = vmatpush1.bf16.msra.mxu1 %v3102_v48 }
 0x105   : > { %v491_v4 = vpop.f32.mrf.mxu0  ;;  %v604_v5 = vpop.f32.mrf.mxu1  ;;  %1765 = vmatprep.subr.bf16.mxu0 %v3107_v49  ;;  %1878 = vmatprep.subr.bf16.mxu1 %v3110_v53  ;;  %v3117_v53 = vld [vmem:[#allocation2 + $0x8] ss:$16 sps:$4 sm:$0xff]  }
 0x106   : > { %v672_v10 = vmax.f32 %v488_v62, 0.0  ;;  %v674_v13 = vmax.f32 %v601_v63, 0.0  ;;  %v3493_v24 = vpack.c.bf16 %v671_v2, %v667_v14  ;;  %v3495_v25 = vpack.c.bf16 %v673_v3, %v669_v17  ;;  %v3120_v62 = vld [vmem:[#allocation2 + $0x208] ss:$16 sps:$4 sm:$0xff]   ;;  %v3125_v63 = vld [vmem:[#allocation2 + $0x1ec] ss:$16 sps:$4 sm:$0xff]  }
 0x107   : > { %v493_v18 = vpop.f32.mrf.mxu0  ;;  %v606_v19 = vpop.f32.mrf.mxu1  ;;  %v492_v43 = vadd.f32 %v491_v4, %v3415_v46  ;;  %v605_v48 = vadd.f32 %v604_v5, %v3419_v47  ;;  %v3123_v14 = vld [vmem:[#allocation2 + $0x1e8] ss:$16 sps:$4 sm:$0xff]  }
 0x108   : > { %1766 = vmatpush1.bf16.msra.mxu0 %v3105_v1  ;;  %v3489_v21 = vpack.c.bf16 %v672_v10, %v668_v8  ;;  %v3491_v22 = vpack.c.bf16 %v674_v13, %v670_v9  ;;  %v494_v26 = vadd.f32 %v493_v18, %v3407_v44  ;;  %1879 = vmatpush1.bf16.msra.mxu1 %v3108_v6  ;;  %v3128_v9 = vld [vmem:[#allocation2 + $0x3ec] ss:$16 sps:$4 sm:$0xff]  }
 0x109   : > { %v495_v0 = vpop.f32.mrf.mxu0  ;;  %v608_v27 = vpop.f32.mrf.mxu1  ;;  %1767 = vmatprep.subr.bf16.mxu0 %v3113_v7  ;;  %v607_v30 = vadd.f32 %v606_v19, %v3411_v45  ;;  %1880 = vmatprep.subr.bf16.mxu1 %v3116_v20  ;;  %v675_v5 = vmax.f32 %v492_v43, 0.0  ;;  %v677_v6 = vmax.f32 %v605_v48, 0.0 }
 0x10a   : > { %v496_v33 = vadd.f32 %v495_v0, %v3415_v46  ;;  %v609_v41 = vadd.f32 %v608_v27, %v3419_v47  ;;  %1591 = vmatprep.mubr.bf16.mxu0 %v3489_v21  ;;  %1704 = vmatprep.mubr.bf16.mxu1 %v3491_v22  ;;  %v676_v1 = vmax.f32 %v494_v26, 0.0  ;;  %v3126_v26 = vld [vmem:[#allocation2 + $0x3e8] ss:$16 sps:$4 sm:$0xff]   ;;  %v3131_v0 = vld [vmem:[#allocation2 + $0x1cc] ss:$16 sps:$4 sm:$0xff]  }
 0x10b   : > { %v497_v49 = vpop.f32.mrf.mxu0  ;;  %v610_v50 = vpop.f32.mrf.mxu1  ;;  %1592 = vmatmul.mubr.bf16.gmra.mxu0 %v3493_v24  ;;  %1705 = vmatmul.mubr.bf16.gmra.mxu1 %v3495_v25  ;;  %v678_v2 = vmax.f32 %v607_v30, 0.0  ;;  %v3134_v30 = vld [vmem:[#allocation2 + $0x3cc] ss:$16 sps:$4 sm:$0xff]  }
 0x10c   : > { %v498_v51 = vadd.f32 %v497_v49, %v3407_v44  ;;  %v611_v52 = vadd.f32 %v610_v50, %v3411_v45  ;;  %1768 = vmatpush1.bf16.msra.mxu0 %v3111_v23  ;;  %v679_v54 = vmax.f32 %v496_v33, 0.0  ;;  %v681_v56 = vmax.f32 %v609_v41, 0.0  ;;  %1881 = vmatpush1.bf16.msra.mxu1 %v3114_v28  ;;  %v3129_v50 = vld [vmem:[#allocation2 + $0x1c8] ss:$16 sps:$4 sm:$0xff]  }
 0x10d   : > { %v501_v59 = vpop.f32.mrf.mxu0  ;;  %v614_v60 = vpop.f32.mrf.mxu1  ;;  %1769 = vmatprep.subr.bf16.mxu0 %v3119_v29  ;;  %1882 = vmatprep.subr.bf16.mxu1 %v3122_v42 }
 0x10e   : > { %v680_v3 = vmax.f32 %v498_v51, 0.0  ;;  %v682_v4 = vmax.f32 %v611_v52, 0.0  ;;  %v3513_v17 = vpack.c.bf16 %v679_v54, %v675_v5  ;;  %v3515_v18 = vpack.c.bf16 %v681_v56, %v677_v6  ;;  %v3132_v56 = vld [vmem:[#allocation2 + $0x3c8] ss:$16 sps:$4 sm:$0xff]   ;;  %v3140_v6 = vld [vmem:[#allocation2 + $0x3ac] ss:$16 sps:$4 sm:$0xff]  }
 0x10f   : > { %v503_v7 = vpop.f32.mrf.mxu0  ;;  %v616_v8 = vpop.f32.mrf.mxu1  ;;  %v502_v33 = vadd.f32 %v501_v59, %v3415_v46  ;;  %v615_v41 = vadd.f32 %v614_v60, %v3419_v47  ;;  %v3137_v59 = vld [vmem:[#allocation2 + $0x1ac] ss:$16 sps:$4 sm:$0xff]  }
 0x110   : > { %v3509_v10 = vpack.c.bf16 %v680_v3, %v676_v1  ;;  %v3511_v13 = vpack.c.bf16 %v682_v4, %v678_v2  ;;  %1770 = vmatpush1.bf16.msra.mxu0 %v3117_v53  ;;  %v504_v19 = vadd.f32 %v503_v7, %v3407_v44  ;;  %1883 = vmatpush1.bf16.msra.mxu1 %v3120_v62 }
 0x111   : > { %v505_v20 = vpop.f32.mrf.mxu0  ;;  %v618_v23 = vpop.f32.mrf.mxu1  ;;  %1771 = vmatprep.subr.bf16.mxu0 %v3125_v63  ;;  %v617_v27 = vadd.f32 %v616_v8, %v3411_v45  ;;  %1884 = vmatprep.subr.bf16.mxu1 %v3128_v9  ;;  %v683_v2 = vmax.f32 %v502_v33, 0.0  ;;  %v685_v3 = vmax.f32 %v615_v41, 0.0  ;;  %v3135_v9 = vld [vmem:[#allocation2 + $0x1a8] ss:$16 sps:$4 sm:$0xff]   ;;  %v3146_v33 = vld [vmem:[#allocation2 + $0x38c] ss:$16 sps:$4 sm:$0xff]  }
 0x112   : > { %v506_v28 = vadd.f32 %v505_v20, %v3415_v46  ;;  %v619_v29 = vadd.f32 %v618_v23, %v3419_v47  ;;  %1601 = vmatprep.mubr.bf16.mxu0 %v3509_v10  ;;  %1714 = vmatprep.mubr.bf16.mxu1 %v3511_v13  ;;  %v684_v60 = vmax.f32 %v504_v19, 0.0 }
 0x113   : > { %v507_v42 = vpop.f32.mrf.mxu0  ;;  %v620_v43 = vpop.f32.mrf.mxu1  ;;  %1602 = vmatmul.mubr.bf16.gmra.mxu0 %v3513_v17  ;;  %1715 = vmatmul.mubr.bf16.gmra.mxu1 %v3515_v18  ;;  %v686_v62 = vmax.f32 %v617_v27, 0.0  ;;  %v3143_v27 = vld [vmem:[#allocation2 + $0x18c] ss:$16 sps:$4 sm:$0xff]  }
 0x114   : > { %v508_v48 = vadd.f32 %v507_v42, %v3407_v44  ;;  %v621_v49 = vadd.f32 %v620_v43, %v3411_v45  ;;  %1772 = vmatpush2.bf16.msra.mxu0 %v3123_v14  ;;  %v687_v51 = vmax.f32 %v506_v28, 0.0  ;;  %v689_v52 = vmax.f32 %v619_v29, 0.0  ;;  %1885 = vmatpush2.bf16.msra.mxu1 %v3126_v26 }
 0x115   : > { %v511_v53 = vpop.f32.mrf.mxu0  ;;  %v624_v54 = vpop.f32.mrf.mxu1  ;;  %1773 = vmatprep.subr.bf16.mxu0 %v3131_v0  ;;  %1886 = vmatprep.subr.bf16.mxu1 %v3134_v30  ;;  %v3138_v0 = vld [vmem:[#allocation2 + $0x3a8] ss:$16 sps:$4 sm:$0xff]  }
 0x116   : > { %v688_v63 = vmax.f32 %v508_v48, 0.0  ;;  %v690_v1 = vmax.f32 %v621_v49, 0.0  ;;  %v3533_v14 = vpack.c.bf16 %v687_v51, %v683_v2  ;;  %v3535_v20 = vpack.c.bf16 %v689_v52, %v685_v3  ;;  %v3141_v51 = vld [vmem:[#allocation2 + $0x188] ss:$16 sps:$4 sm:$0xff]  }
 0x117   : > { %v513_v4 = vpop.f32.mrf.mxu0  ;;  %v626_v5 = vpop.f32.mrf.mxu1  ;;  %v512_v41 = vadd.f32 %v511_v53, %v3415_v46  ;;  %v625_v42 = vadd.f32 %v624_v54, %v3419_v47  ;;  %v3144_v54 = vld [vmem:[#allocation2 + $0x388] ss:$16 sps:$4 sm:$0xff]  }
 0x118   : > { %v3529_v7 = vpack.c.bf16 %v688_v63, %v684_v60  ;;  %v3531_v8 = vpack.c.bf16 %v690_v1, %v686_v62  ;;  %1774 = vmatpush2.bf16.msra.mxu0 %v3129_v50  ;;  %v514_v19 = vadd.f32 %v513_v4, %v3407_v44  ;;  %1887 = vmatpush2.bf16.msra.mxu1 %v3132_v56  ;;  %v3149_v60 = vld [vmem:[#allocation2 + $0x16c] ss:$16 sps:$4 sm:$0xff]  }
 0x119   : > { %v515_v23 = vpop.f32.mrf.mxu0  ;;  %v628_v26 = vpop.f32.mrf.mxu1  ;;  %1775 = vmatprep.subr.bf16.mxu0 %v3137_v59  ;;  %v627_v28 = vadd.f32 %v626_v5, %v3411_v45  ;;  %1888 = vmatprep.subr.bf16.mxu1 %v3140_v6  ;;  %v691_v3 = vmax.f32 %v512_v41, 0.0  ;;  %v693_v4 = vmax.f32 %v625_v42, 0.0  ;;  %v3155_v41 = vld [vmem:[#allocation2 + $0x14c] ss:$16 sps:$4 sm:$0xff]  }
 0x11a   : > { %v516_v29 = vadd.f32 %v515_v23, %v3415_v46  ;;  %v629_v30 = vadd.f32 %v628_v26, %v3419_v47  ;;  %1611 = vmatprep.mubr.bf16.mxu0 %v3529_v7  ;;  %1724 = vmatprep.mubr.bf16.mxu1 %v3531_v8  ;;  %v692_v62 = vmax.f32 %v514_v19, 0.0  ;;  %v3152_v23 = vld [vmem:[#allocation2 + $0x36c] ss:$16 sps:$4 sm:$0xff]  }
 0x11b   : > { %v517_v43 = vpop.f32.mrf.mxu0  ;;  %v630_v48 = vpop.f32.mrf.mxu1  ;;  %1612 = vmatmul.mubr.bf16.gmra.mxu0 %v3533_v14  ;;  %1725 = vmatmul.mubr.bf16.gmra.mxu1 %v3535_v20  ;;  %v694_v63 = vmax.f32 %v627_v28, 0.0 }
 0x11c   : > { %v518_v49 = vadd.f32 %v517_v43, %v3407_v44  ;;  %v631_v50 = vadd.f32 %v630_v48, %v3411_v45  ;;  %1776 = vmatpush2.bf16.msra.mxu0 %v3135_v9  ;;  %v695_v52 = vmax.f32 %v516_v29, 0.0  ;;  %v697_v56 = vmax.f32 %v629_v30, 0.0  ;;  %1889 = vmatpush2.bf16.msra.mxu1 %v3138_v0  ;;  %v3147_v0 = vld [vmem:[#allocation2 + $0x168] ss:$16 sps:$4 sm:$0xff]  }
 0x11d   : > { %v521_v59 = vpop.f32.mrf.mxu0  ;;  %v634_v53 = vpop.f32.mrf.mxu1  ;;  %1777 = vmatprep.subr.bf16.mxu0 %v3143_v27  ;;  %1890 = vmatprep.subr.bf16.mxu1 %v3146_v33  ;;  %v3150_v33 = vld [vmem:[#allocation2 + $0x368] ss:$16 sps:$4 sm:$0xff]  }
 0x11e   : > { %v696_v1 = vmax.f32 %v518_v49, 0.0  ;;  %v698_v2 = vmax.f32 %v631_v50, 0.0  ;;  %v3553_v29 = vpack.c.bf16 %v695_v52, %v691_v3  ;;  %v3555_v27 = vpack.c.bf16 %v697_v56, %v693_v4  ;;  %v3158_v49 = vld [vmem:[#allocation2 + $0x34c] ss:$16 sps:$4 sm:$0xff]  }
 0x11f   : > { %v523_v5 = vpop.f32.mrf.mxu0  ;;  %v636_v6 = vpop.f32.mrf.mxu1  ;;  %v522_v50 = vadd.f32 %v521_v59, %v3415_v46  ;;  %v635_v56 = vadd.f32 %v634_v53, %v3419_v47  ;;  %v3161_v59 = vld [vmem:[#allocation2 + $0x12c] ss:$16 sps:$4 sm:$0xff]  }
 0x120   : > { %v3549_v9 = vpack.c.bf16 %v696_v1, %v692_v62  ;;  %v3551_v26 = vpack.c.bf16 %v698_v2, %v694_v63  ;;  %1778 = vmatpush2.bf16.msra.mxu0 %v3141_v51  ;;  %v524_v19 = vadd.f32 %v523_v5, %v3407_v44  ;;  %1891 = vmatpush2.bf16.msra.mxu1 %v3144_v54  ;;  %v3153_v62 = vld [vmem:[#allocation2 + $0x148] ss:$16 sps:$4 sm:$0xff]   ;;  %v3164_v53 = vld [vmem:[#allocation2 + $0x32c] ss:$16 sps:$4 sm:$0xff]  }
 0x121   : > { %v525_v28 = vpop.f32.mrf.mxu0  ;;  %v638_v30 = vpop.f32.mrf.mxu1  ;;  %1779 = vmatprep.subr.bf16.mxu0 %v3149_v60  ;;  %v637_v42 = vadd.f32 %v636_v6, %v3411_v45  ;;  %1892 = vmatprep.subr.bf16.mxu1 %v3152_v23  ;;  %v3159_v23 = vld [vmem:[#allocation2 + $0x128] ss:$16 sps:$4 sm:$0xff]  }
 0x122   : > { %v526_v43 = vadd.f32 %v525_v28, %v3415_v46  ;;  %v639_v48 = vadd.f32 %v638_v30, %v3419_v47  ;;  %1621 = vmatprep.mubr.bf16.mxu0 %v3549_v9  ;;  %1734 = vmatprep.mubr.bf16.mxu1 %v3551_v26  ;;  %v700_v63 = vmax.f32 %v524_v19, 0.0  ;;  %v3156_v46 = vld [vmem:[#allocation2 + $0x348] ss:$16 sps:$4 sm:$0xff]   ;;  %v699_v47 = vmax.f32 %v522_v50, 0.0  ;;  %v3167_v30 = vld [vmem:[#allocation2 + $0x10c] ss:$16 sps:$4 sm:$0xff]  }
 0x123   : > { %v527_v51 = vpop.f32.mrf.mxu0  ;;  %v640_v52 = vpop.f32.mrf.mxu1  ;;  %1622 = vmatmul.mubr.bf16.gmra.mxu0 %v3553_v29  ;;  %1735 = vmatmul.mubr.bf16.gmra.mxu1 %v3555_v27  ;;  %v702_v2 = vmax.f32 %v637_v42, 0.0  ;;  %v3162_v19 = vld [vmem:[#allocation2 + $0x328] ss:$16 sps:$4 sm:$0xff]   ;;  %v3186_v50 = vld [vmem:[%s3872_s5] sm:$0xff]  }
 0x124   : > { %v528_v54 = vadd.f32 %v527_v51, %v3407_v44  ;;  %v641_v60 = vadd.f32 %v640_v52, %v3411_v45  ;;  %1780 = vmatpush2.bf16.msra.mxu0 %v3147_v0  ;;  %v703_v1 = vmax.f32 %v526_v43, 0.0  ;;  %1893 = vmatpush2.bf16.msra.mxu1 %v3150_v33  ;;  %v705_v3 = vmax.f32 %v639_v48, 0.0  ;;  %v3170_v33 = vld [vmem:[#allocation2 + $0x30c] ss:$16 sps:$4 sm:$0xff]   ;;  %v3168_v42 = vld [vmem:[#allocation2 + $0x308] ss:$16 sps:$4 sm:$0xff]  }
 0x125   : > { %1781 = vmatprep.subr.bf16.mxu0 %v3155_v41  ;;  %1894 = vmatprep.subr.bf16.mxu1 %v3158_v49  ;;  %v701_v44 = vmax.f32 %v635_v56, 0.0  ;;  %v3165_v41 = vld [vmem:[#allocation2 + $0x108] ss:$16 sps:$4 sm:$0xff]   ;;  %v3189_v51 = vld [vmem:[%s3872_s5 + $0xf0] sm:$0xff]  }
 0x126   : > { %v704_v4 = vmax.f32 %v528_v54, 0.0  ;;  %v706_v5 = vmax.f32 %v641_v60, 0.0  ;;  %v3573_v0 = vpack.c.bf16 %v703_v1, %v699_v47  ;;  %v3171_v43 = vld [vmem:[%s3872_s5 + $0x78] sm:$0xff]   ;;  %v3175_v49 = vld [vmem:[%s3872_s5 + $0x68] sm:$0xff]  }
 0x127   : > { %v3575_v28 = vpack.c.bf16 %v705_v3, %v701_v44  ;;  %v3172_v48 = vld [vmem:[%s3872_s5 + $0x38] sm:$0xff]  }
 0x128   : > { %v3569_v6 = vpack.c.bf16 %v704_v4, %v700_v63  ;;  %v3571_v45 = vpack.c.bf16 %v706_v5, %v702_v2  ;;  %1782 = vmatpush2.bf16.msra.mxu0 %v3153_v62  ;;  %1895 = vmatpush2.bf16.msra.mxu1 %v3156_v46 }
 0x129   : > { %1783 = vmatprep.subr.bf16.mxu0 %v3161_v59  ;;  %1896 = vmatprep.subr.bf16.mxu1 %v3164_v53 }
 0x12a   : > { %1631 = vmatprep.mubr.bf16.mxu0 %v3569_v6  ;;  %1744 = vmatprep.mubr.bf16.mxu1 %v3571_v45 }
 0x12b   : > { %1632 = vmatmul.mubr.bf16.gmra.mxu0 %v3573_v0  ;;  %1745 = vmatmul.mubr.bf16.gmra.mxu1 %v3575_v28 }
 0x12c   : > { %1784 = vmatpush2.bf16.msra.mxu0 %v3159_v23  ;;  %1787 = vmatprep.mubr.bf16.mxu0 %v3429_v11  ;;  %v3173_v11 = vld [vmem:[%s3872_s5 + $0x70] sm:$0xff]  }
 0x12d   : > { %1897 = vmatpush2.bf16.msra.mxu1 %v3162_v19  ;;  %1900 = vmatprep.mubr.bf16.mxu1 %v3431_v12  ;;  %v3174_v12 = vld [vmem:[%s3872_s5 + $0x30] sm:$0xff]  }
 0x12e   : > { %1785 = vmatprep.subr.bf16.mxu0 %v3167_v30  ;;  %1898 = vmatprep.subr.bf16.mxu1 %v3170_v33 }
 0x130   : > { %1786 = vmatpush2.bf16.msra.mxu0 %v3165_v41 }
 0x131   : > { %1899 = vmatpush2.bf16.msra.mxu1 %v3168_v42  ;;  %2817 = vmatprep.subr.bf16.mxu0 %v3171_v43 }
 0x133   : > { %1788 = vmatmul.mubr.bf16.vlgmr.msra.gmra.mxu0 %v3433_v15  ;;  %v3176_v15 = vld [vmem:[%s3872_s5 + $0x28] sm:$0xff]  }
 0x134   : > { %1901 = vmatmul.mubr.bf16.vlgmr.msra.gmra.mxu1 %v3435_v16  ;;  %1797 = vmatprep.mubr.bf16.mxu0 %v3449_v55  ;;  %v3177_v16 = vld [vmem:[%s3872_s5 + $0x60] sm:$0xff]  }
 0x135   : > { %1910 = vmatprep.mubr.bf16.mxu1 %v3455_v61  ;;  %2818 = vmatpush3.bf16.msra.mxu0 %v3172_v48  ;;  %v3178_v55 = vld [vmem:[%s3872_s5 + $0x20] sm:$0xff]   ;;  %v3179_v61 = vld [vmem:[%s3872_s5 + $0x58] sm:$0xff]  }
 0x136   : > { %2819 = vmatprep.subr.bf16.mxu0 %v3173_v11 }
 0x139   : > { %2820 = vmatpush3.bf16.msra.mxu0 %v3174_v12 }
 0x13a   : > { %2821 = vmatprep.subr.bf16.mxu0 %v3175_v49 }
 0x13b   : > { %1798 = vmatmul.mubr.bf16.gmra.mxu0 %v3451_v57  ;;  %v3180_v57 = vld [vmem:[%s3872_s5 + $0x18] sm:$0xff]  }
 0x13c   : > { %1911 = vmatmul.mubr.bf16.gmra.mxu1 %v3453_v58  ;;  %1807 = vmatprep.mubr.bf16.mxu0 %v3469_v31  ;;  %v3181_v58 = vld [vmem:[%s3872_s5 + $0x50] sm:$0xff]  }
 0x13d   : > { %1920 = vmatprep.mubr.bf16.mxu1 %v3471_v32  ;;  %2822 = vmatpush3.bf16.msra.mxu0 %v3176_v15  ;;  %v3182_v31 = vld [vmem:[%s3872_s5 + $0x10] sm:$0xff]   ;;  %v3183_v32 = vld [vmem:[%s3872_s5 + $0x48] sm:$0xff]  }
 0x13e   : > { %2823 = vmatprep.subr.bf16.mxu0 %v3177_v16 }
 0x141   : > { %2824 = vmatpush3.bf16.msra.mxu0 %v3178_v55 }
 0x142   : > { %2825 = vmatprep.subr.bf16.mxu0 %v3179_v61 }
 0x143   : > { %1808 = vmatmul.mubr.bf16.gmra.mxu0 %v3473_v34  ;;  %v3187_v34 = vld [vmem:[%s3872_s5 + $0xf8] sm:$0xff]  }
 0x144   : > { %1921 = vmatmul.mubr.bf16.gmra.mxu1 %v3475_v35  ;;  %1817 = vmatprep.mubr.bf16.mxu0 %v3489_v21  ;;  %v3188_v35 = vld [vmem:[%s3872_s5 + $0xb8] sm:$0xff]   ;;  %v3184_v21 = vld [vmem:[%s3872_s5 + $0x8] sm:$0xff]  }
 0x145   : > { %1930 = vmatprep.mubr.bf16.mxu1 %v3491_v22  ;;  %2826 = vmatpush3.bf16.msra.mxu0 %v3180_v57  ;;  %v3185_v22 = vld [vmem:[%s3872_s5 + $0x40] sm:$0xff]  }
 0x146   : > { %2827 = vmatprep.subr.bf16.mxu0 %v3181_v58  ;;  %2881 = vmatprep.subr.bf16.mxu1 %v3187_v34 }
 0x147   : > { %2882 = vmatpush3.bf16.msra.mxu1 %v3188_v35 }
 0x148   : > { %2883 = vmatprep.subr.bf16.mxu1 %v3189_v51 }
 0x149   : > { %2828 = vmatpush3.bf16.msra.mxu0 %v3182_v31 }
 0x14a   : > { %2829 = vmatprep.subr.bf16.mxu0 %v3183_v32 }
 0x14b   : > { %1818 = vmatmul.mubr.bf16.gmra.mxu0 %v3493_v24  ;;  %v3190_v24 = vld [vmem:[%s3872_s5 + $0xb0] sm:$0xff]  }
 0x14c   : > { %1931 = vmatmul.mubr.bf16.gmra.mxu1 %v3495_v25  ;;  %1827 = vmatprep.mubr.bf16.mxu0 %v3509_v10  ;;  %v3191_v25 = vld [vmem:[%s3872_s5 + $0xe8] sm:$0xff]  }
 0x14d   : > { %1940 = vmatprep.mubr.bf16.mxu1 %v3511_v13  ;;  %2830 = vmatpush3.bf16.msra.mxu0 %v3184_v21  ;;  %v3192_v10 = vld [vmem:[%s3872_s5 + $0xa8] sm:$0xff]   ;;  %v3193_v13 = vld [vmem:[%s3872_s5 + $0xe0] sm:$0xff]  }
 0x14e   : > { %2831 = vmatprep.subr.bf16.mxu0 %v3185_v22  ;;  %2884 = vmatpush3.bf16.msra.mxu1 %v3190_v24 }
 0x14f   : > { %2885 = vmatprep.subr.bf16.mxu1 %v3191_v25 }
 0x151   : > { %2832 = vmatpush3.bf16.msra.mxu0 %v3186_v50 }
 0x152   : > { %2886 = vmatpush3.bf16.msra.mxu1 %v3192_v10 }
 0x153   : > { %1828 = vmatmul.mubr.bf16.gmra.mxu0 %v3513_v17  ;;  %v3194_v17 = vld [vmem:[%s3872_s5 + $0xa0] sm:$0xff]   ;;  %2887 = vmatprep.subr.bf16.mxu1 %v3193_v13 }
 0x154   : > { %1941 = vmatmul.mubr.bf16.gmra.mxu1 %v3515_v18  ;;  %1837 = vmatprep.mubr.bf16.mxu0 %v3529_v7  ;;  %v3195_v18 = vld [vmem:[%s3872_s5 + $0xd8] sm:$0xff]  }
 0x155   : > { %1950 = vmatprep.mubr.bf16.mxu1 %v3531_v8  ;;  %v3196_v7 = vld [vmem:[%s3872_s5 + $0x98] sm:$0xff]   ;;  %v3197_v8 = vld [vmem:[%s3872_s5 + $0xd0] sm:$0xff]  }
 0x156   : > { %2888 = vmatpush3.bf16.msra.mxu1 %v3194_v17 }
 0x157   : > { %2889 = vmatprep.subr.bf16.mxu1 %v3195_v18 }
 0x15a   : > { %2890 = vmatpush3.bf16.msra.mxu1 %v3196_v7 }
 0x15b   : > { %1838 = vmatmul.mubr.bf16.gmra.mxu0 %v3533_v14  ;;  %v3198_v14 = vld [vmem:[%s3872_s5 + $0x90] sm:$0xff]   ;;  %2891 = vmatprep.subr.bf16.mxu1 %v3197_v8 }
 0x15c   : > { %1951 = vmatmul.mubr.bf16.gmra.mxu1 %v3535_v20  ;;  %1847 = vmatprep.mubr.bf16.mxu0 %v3549_v9  ;;  %v3199_v20 = vld [vmem:[%s3872_s5 + $0xc8] sm:$0xff]  }
 0x15d   : > { %1960 = vmatprep.mubr.bf16.mxu1 %v3551_v26  ;;  %v3200_v9 = vld [vmem:[%s3872_s5 + $0x88] sm:$0xff]   ;;  %v3201_v26 = vld [vmem:[%s3872_s5 + $0xc0] sm:$0xff]  }
 0x15e   : > { %2892 = vmatpush3.bf16.msra.mxu1 %v3198_v14 }
 0x15f   : > { %2893 = vmatprep.subr.bf16.mxu1 %v3199_v20 }
 0x162   : > { %2894 = vmatpush3.bf16.msra.mxu1 %v3200_v9 }
 0x163   : > { %1848 = vmatmul.mubr.bf16.gmra.mxu0 %v3553_v29  ;;  %v3202_v29 = vld [vmem:[%s3872_s5 + $0x80] sm:$0xff]   ;;  %2895 = vmatprep.subr.bf16.mxu1 %v3201_v26 }
 0x164   : > { %1961 = vmatmul.mubr.bf16.gmra.mxu1 %v3555_v27  ;;  %1857 = vmatprep.mubr.bf16.mxu0 %v3569_v6  ;;  %v3712_v27 = vld [vmem:[%s3871_s4] sm:$0xf] }
 0x165   : > { %1970 = vmatprep.mubr.bf16.mxu1 %v3571_v45  ;;  %v3717_v52 = vrot.slane %v3712_v27, %v338_v37  ;;  %v3722_v56 = vrot.slane %v3712_v27, %v334_v39 }
 0x166   : > { %2896 = vmatpush3.bf16.msra.mxu1 %v3202_v29 }
 0x16b   : > { %1858 = vmatmul.mubr.bf16.gmra.mxu0 %v3573_v0 }
 0x16c   : > { %1971 = vmatmul.mubr.bf16.gmra.mxu1 %v3575_v28 }
 0x1b3   : > { %v1563_v54 = vpop.f32.mrf.mxu0  ;;  %v1676_v60 = vpop.f32.mrf.mxu1 }
 0x1b4   : > { %v1564_v46 = vadd.f32 %v1563_v54, %v3722_v56 }
 0x1b5   : > { %v1565_v62 = vpop.f32.mrf.mxu0  ;;  %v1678_v63 = vpop.f32.mrf.mxu1 }
 0x1b6   : > { %v1566_v1 = vadd.f32 %v1565_v62, %v3717_v52  ;;  %v1677_v39 = vadd.f32 %v1676_v60, %v1564_v46 }
 0x1b7   : > { %v1567_v59 = vpop.f32.mrf.mxu0  ;;  %v1680_v2 = vpop.f32.mrf.mxu1 }
 0x1b8   : > { %v1568_v3 = vadd.f32 %v1567_v59, %v3722_v56  ;;  %v1679_v5 = vadd.f32 %v1678_v63, %v1566_v1  ;;  %v1981_v41 = vmax.f32 %v1677_v39, 0.0 }
 0x1b9   : > { %v1569_v4 = vpop.f32.mrf.mxu0  ;;  %v1682_v37 = vpop.f32.mrf.mxu1 }
 0x1ba   : > { %v1681_v47 = vadd.f32 %v1680_v2, %v1568_v3  ;;  %v1570_v53 = vadd.f32 %v1569_v4, %v3717_v52  ;;  %v1982_v19 = vmax.f32 %v1679_v5, 0.0 }
 0x1bb   : > { %v1573_v44 = vpop.f32.mrf.mxu0  ;;  %v1686_v45 = vpop.f32.mrf.mxu1 }
 0x1bc   : > { %v1683_v6 = vadd.f32 %v1682_v37, %v1570_v53  ;;  %v1985_v23 = vmax.f32 %v1681_v47, 0.0  ;;  %v1574_v42 = vadd.f32 %v1573_v44, %v3722_v56 }
 0x1bd   : > { %v1575_v0 = vpop.f32.mrf.mxu0  ;;  %v1688_v33 = vpop.f32.mrf.mxu1 }
 0x1be   : > { %v1986_v28 = vmax.f32 %v1683_v6, 0.0  ;;  %v1576_v30 = vadd.f32 %v1575_v0, %v3717_v52  ;;  %v2045_v49 = vpack.c.bf16 %v1985_v23, %v1981_v41  ;;  %v1687_v58 = vadd.f32 %v1686_v45, %v1574_v42 }
 0x1bf   : > { %v1577_v43 = vpop.f32.mrf.mxu0  ;;  %v1690_v12 = vpop.f32.mrf.mxu1 }
 0x1c0   : > { %v2046_v48 = vpack.c.bf16 %v1986_v28, %v1982_v19  ;;  %v1578_v11 = vadd.f32 %v1577_v43, %v3722_v56  ;;  %v1689_v16 = vadd.f32 %v1688_v33, %v1576_v30  ;;  %v1989_v25 = vmax.f32 %v1687_v58, 0.0 }
 0x1c1   : > { %v1579_v15 = vpop.f32.mrf.mxu0  ;;  %v1692_v57 = vpop.f32.mrf.mxu1 }
 0x1c2   : > { %v1691_v55 = vadd.f32 %v1690_v12, %v1578_v11  ;;  %v1580_v61 = vadd.f32 %v1579_v15, %v3717_v52  ;;  %2372 = vmatprep.mubr.bf16.mxu0 %v2046_v48  ;;  %v1990_v22 = vmax.f32 %v1689_v16, 0.0 }
 0x1c3   : > { %v1583_v31 = vpop.f32.mrf.mxu0  ;;  %2373 = vmatmul.mubr.bf16.vlgmr.msra.gmra.mxu0 %v2045_v49  ;;  %v1696_v34 = vpop.f32.mrf.mxu1 }
 0x1c4   : > { %v1693_v32 = vadd.f32 %v1692_v57, %v1580_v61  ;;  %v1993_v35 = vmax.f32 %v1691_v55, 0.0  ;;  %v1584_v10 = vadd.f32 %v1583_v31, %v3722_v56 }
 0x1c5   : > { %v1585_v21 = vpop.f32.mrf.mxu0  ;;  %v1698_v24 = vpop.f32.mrf.mxu1 }
 0x1c6   : > { %v1994_v50 = vmax.f32 %v1693_v32, 0.0  ;;  %v1586_v51 = vadd.f32 %v1585_v21, %v3717_v52  ;;  %v2049_v8 = vpack.c.bf16 %v1993_v35, %v1989_v25  ;;  %v1697_v54 = vadd.f32 %v1696_v34, %v1584_v10 }
 0x1c7   : > { %v1587_v13 = vpop.f32.mrf.mxu0  ;;  %v1700_v7 = vpop.f32.mrf.mxu1 }
 0x1c8   : > { %v2050_v17 = vpack.c.bf16 %v1994_v50, %v1990_v22  ;;  %v1588_v18 = vadd.f32 %v1587_v13, %v3722_v56  ;;  %v1699_v20 = vadd.f32 %v1698_v24, %v1586_v51  ;;  %v1997_v37 = vmax.f32 %v1697_v54, 0.0 }
 0x1c9   : > { %v1589_v14 = vpop.f32.mrf.mxu0  ;;  %v1702_v29 = vpop.f32.mrf.mxu1 }
 0x1ca   : > { %v1701_v9 = vadd.f32 %v1700_v7, %v1588_v18  ;;  %v1590_v26 = vadd.f32 %v1589_v14, %v3717_v52  ;;  %2380 = vmatprep.mubr.bf16.mxu0 %v2050_v17  ;;  %v1998_v59 = vmax.f32 %v1699_v20, 0.0 }
 0x1cb   : > { %v1593_v60 = vpop.f32.mrf.mxu0  ;;  %2381 = vmatmul.mubr.bf16.gmra.mxu0 %v2049_v8  ;;  %v1706_v63 = vpop.f32.mrf.mxu1 }
 0x1cc   : > { %v1703_v62 = vadd.f32 %v1702_v29, %v1590_v26  ;;  %v2001_v1 = vmax.f32 %v1701_v9, 0.0  ;;  %v1594_v5 = vadd.f32 %v1593_v60, %v3722_v56 }
 0x1cd   : > { %v1595_v46 = vpop.f32.mrf.mxu0  ;;  %v1708_v4 = vpop.f32.mrf.mxu1 }
 0x1ce   : > { %v2002_v2 = vmax.f32 %v1703_v62, 0.0  ;;  %v1596_v3 = vadd.f32 %v1595_v46, %v3717_v52  ;;  %v2053_v6 = vpack.c.bf16 %v2001_v1, %v1997_v37  ;;  %v1707_v30 = vadd.f32 %v1706_v63, %v1594_v5 }
 0x1cf   : > { %v1597_v47 = vpop.f32.mrf.mxu0  ;;  %v1710_v44 = vpop.f32.mrf.mxu1 }
 0x1d0   : > { %v2054_v53 = vpack.c.bf16 %v2002_v2, %v1998_v59  ;;  %v1598_v39 = vadd.f32 %v1597_v47, %v3722_v56  ;;  %v1709_v23 = vadd.f32 %v1708_v4, %v1596_v3  ;;  %v2005_v16 = vmax.f32 %v1707_v30, 0.0 }
 0x1d1   : > { %v1599_v45 = vpop.f32.mrf.mxu0  ;;  %v1712_v28 = vpop.f32.mrf.mxu1 }
 0x1d2   : > { %v1711_v0 = vadd.f32 %v1710_v44, %v1598_v39  ;;  %v1600_v19 = vadd.f32 %v1599_v45, %v3717_v52  ;;  %2388 = vmatprep.mubr.bf16.mxu0 %v2054_v53  ;;  %v2006_v11 = vmax.f32 %v1709_v23, 0.0 }
 0x1d3   : > { %v1603_v33 = vpop.f32.mrf.mxu0  ;;  %2389 = vmatmul.mubr.bf16.gmra.mxu0 %v2053_v6  ;;  %v1716_v42 = vpop.f32.mrf.mxu1 }
 0x1d4   : > { %v1713_v41 = vadd.f32 %v1712_v28, %v1600_v19  ;;  %v2009_v43 = vmax.f32 %v1711_v0, 0.0  ;;  %v1604_v55 = vadd.f32 %v1603_v33, %v3722_v56 }
 0x1d5   : > { %v1605_v48 = vpop.f32.mrf.mxu0  ;;  %v1718_v15 = vpop.f32.mrf.mxu1 }
 0x1d6   : > { %v2010_v12 = vmax.f32 %v1713_v41, 0.0  ;;  %v1606_v49 = vadd.f32 %v1605_v48, %v3717_v52  ;;  %v2057_v32 = vpack.c.bf16 %v2009_v43, %v2005_v16  ;;  %v1717_v51 = vadd.f32 %v1716_v42, %v1604_v55 }
 0x1d7   : > { %v1607_v61 = vpop.f32.mrf.mxu0  ;;  %v1720_v31 = vpop.f32.mrf.mxu1 }
 0x1d8   : > { %v2058_v57 = vpack.c.bf16 %v2010_v12, %v2006_v11  ;;  %v1608_v58 = vadd.f32 %v1607_v61, %v3722_v56  ;;  %v1719_v35 = vadd.f32 %v1718_v15, %v1606_v49  ;;  %v2013_v20 = vmax.f32 %v1717_v51, 0.0 }
 0x1d9   : > { %v1609_v34 = vpop.f32.mrf.mxu0  ;;  %v1722_v50 = vpop.f32.mrf.mxu1 }
 0x1da   : > { %v1721_v21 = vadd.f32 %v1720_v31, %v1608_v58  ;;  %v1610_v22 = vadd.f32 %v1609_v34, %v3717_v52  ;;  %2396 = vmatprep.mubr.bf16.mxu0 %v2058_v57  ;;  %v2014_v18 = vmax.f32 %v1719_v35, 0.0 }
 0x1db   : > { %v1613_v24 = vpop.f32.mrf.mxu0  ;;  %2397 = vmatmul.mubr.bf16.gmra.mxu0 %v2057_v32  ;;  %v1726_v10 = vpop.f32.mrf.mxu1 }
 0x1dc   : > { %v1723_v25 = vadd.f32 %v1722_v50, %v1610_v22  ;;  %v2017_v13 = vmax.f32 %v1721_v21, 0.0  ;;  %v1614_v9 = vadd.f32 %v1613_v24, %v3722_v56 }
 0x1dd   : > { %v1615_v17 = vpop.f32.mrf.mxu0  ;;  %v1728_v14 = vpop.f32.mrf.mxu1 }
 0x1de   : > { %v2018_v7 = vmax.f32 %v1723_v25, 0.0  ;;  %v1616_v8 = vadd.f32 %v1615_v17, %v3717_v52  ;;  %v2061_v62 = vpack.c.bf16 %v2017_v13, %v2013_v20  ;;  %v1727_v3 = vadd.f32 %v1726_v10, %v1614_v9 }
 0x1df   : > { %v1617_v26 = vpop.f32.mrf.mxu0  ;;  %v1730_v60 = vpop.f32.mrf.mxu1  ;;  %v3764_v20 = vrot.slane %v3712_v27, %v342_v40 }
 0x1e0   : > { %v2062_v29 = vpack.c.bf16 %v2018_v7, %v2014_v18  ;;  %v1618_v54 = vadd.f32 %v1617_v26, %v3722_v56  ;;  %v1729_v1 = vadd.f32 %v1728_v14, %v1616_v8  ;;  %v2021_v23 = vmax.f32 %v1727_v3, 0.0 }
 0x1e1   : > { %v1619_v63 = vpop.f32.mrf.mxu0  ;;  %v1732_v2 = vpop.f32.mrf.mxu1  ;;  %v3759_v8 = vrot.slane %v3712_v27, %v346_v38 }
 0x1e2   : > { %v1731_v46 = vadd.f32 %v1730_v60, %v1618_v54  ;;  %v1620_v59 = vadd.f32 %v1619_v63, %v3717_v52  ;;  %2404 = vmatprep.mubr.bf16.mxu0 %v2062_v29  ;;  %v2022_v39 = vmax.f32 %v1729_v1, 0.0 }
 0x1e3   : > { %v1623_v4 = vpop.f32.mrf.mxu0  ;;  %2405 = vmatmul.mubr.bf16.gmra.mxu0 %v2061_v62  ;;  %v1736_v5 = vpop.f32.mrf.mxu1 }
 0x1e4   : > { %v1733_v37 = vadd.f32 %v1732_v2, %v1620_v59  ;;  %v2025_v47 = vmax.f32 %v1731_v46, 0.0  ;;  %v1624_v0 = vadd.f32 %v1623_v4, %v3722_v56 }
 0x1e5   : > { %v1625_v53 = vpop.f32.mrf.mxu0  ;;  %v1738_v45 = vpop.f32.mrf.mxu1 }
 0x1e6   : > { %v2026_v44 = vmax.f32 %v1733_v37, 0.0  ;;  %v1626_v6 = vadd.f32 %v1625_v53, %v3717_v52  ;;  %v2065_v41 = vpack.c.bf16 %v2025_v47, %v2021_v23  ;;  %v1737_v49 = vadd.f32 %v1736_v5, %v1624_v0 }
 0x1e7   : > { %v1627_v19 = vpop.f32.mrf.mxu0  ;;  %v1740_v33 = vpop.f32.mrf.mxu1 }
 0x1e8   : > { %v2066_v28 = vpack.c.bf16 %v2026_v44, %v2022_v39  ;;  %v1628_v30 = vadd.f32 %v1627_v19, %v3722_v56  ;;  %v1739_v43 = vadd.f32 %v1738_v45, %v1626_v6  ;;  %v2029_v35 = vmax.f32 %v1737_v49, 0.0 }
 0x1e9   : > { %v1629_v42 = vpop.f32.mrf.mxu0  ;;  %v1742_v12 = vpop.f32.mrf.mxu1 }
 0x1ea   : > { %v1741_v48 = vadd.f32 %v1740_v33, %v1628_v30  ;;  %v1630_v11 = vadd.f32 %v1629_v42, %v3717_v52  ;;  %2412 = vmatprep.mubr.bf16.mxu0 %v2066_v28  ;;  %v2030_v58 = vmax.f32 %v1739_v43, 0.0 }
 0x1eb   : > { %v1633_v15 = vpop.f32.mrf.mxu0  ;;  %2413 = vmatmul.mubr.bf16.gmra.mxu0 %v2065_v41  ;;  %v1746_v55 = vpop.f32.mrf.mxu1 }
 0x1ec   : > { %v1743_v16 = vadd.f32 %v1742_v12, %v1630_v11  ;;  %v2033_v61 = vmax.f32 %v1741_v48, 0.0  ;;  %v1634_v21 = vadd.f32 %v1633_v15, %v3722_v56 }
 0x1ed   : > { %v1635_v57 = vpop.f32.mrf.mxu0  ;;  %v1748_v34 = vpop.f32.mrf.mxu1 }
 0x1ee   : > { %v2034_v31 = vmax.f32 %v1743_v16, 0.0  ;;  %v1636_v32 = vadd.f32 %v1635_v57, %v3717_v52  ;;  %v2069_v25 = vpack.c.bf16 %v2033_v61, %v2029_v35  ;;  %v1747_v14 = vadd.f32 %v1746_v55, %v1634_v21 }
 0x1ef   : > { %v1637_v22 = vpop.f32.mrf.mxu0  ;;  %v1750_v24 = vpop.f32.mrf.mxu1 }
 0x1f0   : > { %v2070_v50 = vpack.c.bf16 %v2034_v31, %v2030_v58  ;;  %v1638_v51 = vadd.f32 %v1637_v22, %v3722_v56  ;;  %v1749_v13 = vadd.f32 %v1748_v34, %v1636_v32  ;;  %v2037_v1 = vmax.f32 %v1747_v14, 0.0 }
 0x1f1   : > { %v1639_v10 = vpop.f32.mrf.mxu0  ;;  %v1752_v7 = vpop.f32.mrf.mxu1 }
 0x1f2   : > { %v1751_v17 = vadd.f32 %v1750_v24, %v1638_v51  ;;  %v1640_v18 = vadd.f32 %v1639_v10, %v3717_v52  ;;  %2420 = vmatprep.mubr.bf16.mxu0 %v2070_v50  ;;  %v2038_v52 = vmax.f32 %v1749_v13, 0.0 }
 0x1f3   : > { %v1789_v56 = vpop.f32.mrf.mxu0  ;;  %2421 = vmatmul.mubr.bf16.gmra.mxu0 %v2069_v25 }
 0x1f4   : > { %v1753_v9 = vadd.f32 %v1752_v7, %v1640_v18  ;;  %v1902_v26 = vpop.f32.mrf.mxu1  ;;  %v2041_v29 = vmax.f32 %v1751_v17, 0.0  ;;  %v1790_v38 = vadd.f32 %v1789_v56, %v3764_v20 }
 0x1f5   : > { %v1791_v54 = vpop.f32.mrf.mxu0 }
 0x1f6   : > { %v2042_v60 = vmax.f32 %v1753_v9, 0.0  ;;  %v1792_v62 = vadd.f32 %v1791_v54, %v3759_v8  ;;  %v1904_v63 = vpop.f32.mrf.mxu1  ;;  %v2073_v27 = vpack.c.bf16 %v2041_v29, %v2037_v1  ;;  %v1903_v47 = vadd.f32 %v1902_v26, %v1790_v38 }
 0x1f7   : > { %v1793_v46 = vpop.f32.mrf.mxu0 }
 0x1f8   : > { %v2074_v59 = vpack.c.bf16 %v2042_v60, %v2038_v52  ;;  %v1794_v36 = vadd.f32 %v1793_v46, %v3764_v20  ;;  %v1906_v40 = vpop.f32.mrf.mxu1  ;;  %v1905_v3 = vadd.f32 %v1904_v63, %v1792_v62  ;;  %v1983_v30 = vmax.f32 %v1903_v47, 0.0 }
 0x1f9   : > { %v1795_v2 = vpop.f32.mrf.mxu0 }
 0x1fa   : > { %v1907_v4 = vadd.f32 %v1906_v40, %v1794_v36  ;;  %v1796_v37 = vadd.f32 %v1795_v2, %v3759_v8  ;;  %v1908_v5 = vpop.f32.mrf.mxu1  ;;  %2428 = vmatprep.mubr.bf16.mxu0 %v2074_v59  ;;  %v1984_v23 = vmax.f32 %v1905_v3, 0.0 }
 0x1fb   : > { %v1799_v53 = vpop.f32.mrf.mxu0  ;;  %2429 = vmatmul.mubr.bf16.gmra.mxu0 %v2073_v27 }
 0x1fc   : > { %v1909_v39 = vadd.f32 %v1908_v5, %v1796_v37  ;;  %v1912_v44 = vpop.f32.mrf.mxu1  ;;  %v1987_v6 = vmax.f32 %v1907_v4, 0.0  ;;  %v1800_v33 = vadd.f32 %v1799_v53, %v3764_v20 }
 0x1fd   : > { %v1801_v45 = vpop.f32.mrf.mxu0 }
 0x1fe   : > { %v1988_v0 = vmax.f32 %v1909_v39, 0.0  ;;  %v1802_v19 = vadd.f32 %v1801_v45, %v3759_v8  ;;  %v1914_v28 = vpop.f32.mrf.mxu1  ;;  %v2047_v11 = vpack.c.bf16 %v1987_v6, %v1983_v30  ;;  %v1913_v61 = vadd.f32 %v1912_v44, %v1800_v33 }
 0x1ff   : > { %v1803_v41 = vpop.f32.mrf.mxu0 }
 0x200   : > { %v2048_v42 = vpack.c.bf16 %v1988_v0, %v1984_v23  ;;  %v1804_v43 = vadd.f32 %v1803_v41, %v3764_v20  ;;  %v1916_v48 = vpop.f32.mrf.mxu1  ;;  %v1915_v49 = vadd.f32 %v1914_v28, %v1802_v19  ;;  %v1991_v51 = vmax.f32 %v1913_v61, 0.0 }
 0x201   : > { %v1805_v12 = vpop.f32.mrf.mxu0 }
 0x202   : > { %v1917_v15 = vadd.f32 %v1916_v48, %v1804_v43  ;;  %v1806_v16 = vadd.f32 %v1805_v12, %v3759_v8  ;;  %v1918_v55 = vpop.f32.mrf.mxu1  ;;  %2469 = vmatprep.mubr.bf16.mxu1 %v2048_v42  ;;  %v1992_v35 = vmax.f32 %v1915_v49, 0.0 }
 0x203   : > { %v1809_v57 = vpop.f32.mrf.mxu0  ;;  %2470 = vmatmul.mubr.bf16.vlgmr.msra.gmra.mxu1 %v2047_v11 }
 0x204   : > { %v1919_v58 = vadd.f32 %v1918_v55, %v1806_v16  ;;  %v1922_v31 = vpop.f32.mrf.mxu1  ;;  %v1995_v32 = vmax.f32 %v1917_v15, 0.0  ;;  %v1810_v24 = vadd.f32 %v1809_v57, %v3764_v20 }
 0x205   : > { %v1811_v34 = vpop.f32.mrf.mxu0 }
 0x206   : > { %v1996_v21 = vmax.f32 %v1919_v58, 0.0  ;;  %v1812_v22 = vadd.f32 %v1811_v34, %v3759_v8  ;;  %v1924_v50 = vpop.f32.mrf.mxu1  ;;  %v2051_v18 = vpack.c.bf16 %v1995_v32, %v1991_v51  ;;  %v1923_v29 = vadd.f32 %v1922_v31, %v1810_v24 }
 0x207   : > { %v1813_v25 = vpop.f32.mrf.mxu0 }
 0x208   : > { %v2052_v10 = vpack.c.bf16 %v1996_v21, %v1992_v35  ;;  %v1814_v13 = vadd.f32 %v1813_v25, %v3764_v20  ;;  %v1926_v17 = vpop.f32.mrf.mxu1  ;;  %v1925_v14 = vadd.f32 %v1924_v50, %v1812_v22  ;;  %v1999_v36 = vmax.f32 %v1923_v29, 0.0 }
 0x209   : > { %v1815_v7 = vpop.f32.mrf.mxu0 }
 0x20a   : > { %v1927_v56 = vadd.f32 %v1926_v17, %v1814_v13  ;;  %v1816_v9 = vadd.f32 %v1815_v7, %v3759_v8  ;;  %v1928_v26 = vpop.f32.mrf.mxu1  ;;  %2477 = vmatprep.mubr.bf16.mxu1 %v2052_v10  ;;  %v2000_v1 = vmax.f32 %v1925_v14, 0.0 }
 0x20b   : > { %v1819_v54 = vpop.f32.mrf.mxu0  ;;  %2478 = vmatmul.mubr.bf16.gmra.mxu1 %v2051_v18 }
 0x20c   : > { %v1929_v52 = vadd.f32 %v1928_v26, %v1816_v9  ;;  %v1932_v60 = vpop.f32.mrf.mxu1  ;;  %v2003_v62 = vmax.f32 %v1927_v56, 0.0  ;;  %v1820_v40 = vadd.f32 %v1819_v54, %v3764_v20 }
 0x20d   : > { %v1821_v63 = vpop.f32.mrf.mxu0 }
 0x20e   : > { %v2004_v38 = vmax.f32 %v1929_v52, 0.0  ;;  %v1822_v46 = vadd.f32 %v1821_v63, %v3759_v8  ;;  %v1934_v59 = vpop.f32.mrf.mxu1  ;;  %v2055_v37 = vpack.c.bf16 %v2003_v62, %v1999_v36  ;;  %v1933_v6 = vadd.f32 %v1932_v60, %v1820_v40 }
 0x20f   : > { %v1823_v27 = vpop.f32.mrf.mxu0 }
 0x210   : > { %v2056_v2 = vpack.c.bf16 %v2004_v38, %v2000_v1  ;;  %v1824_v3 = vadd.f32 %v1823_v27, %v3764_v20  ;;  %v1936_v4 = vpop.f32.mrf.mxu1  ;;  %v1935_v47 = vadd.f32 %v1934_v59, %v1822_v46  ;;  %v2007_v43 = vmax.f32 %v1933_v6, 0.0 }
 0x211   : > { %v1825_v5 = vpop.f32.mrf.mxu0 }
 0x212   : > { %v1937_v53 = vadd.f32 %v1936_v4, %v1824_v3  ;;  %v1826_v39 = vadd.f32 %v1825_v5, %v3759_v8  ;;  %v1938_v44 = vpop.f32.mrf.mxu1  ;;  %2485 = vmatprep.mubr.bf16.mxu1 %v2056_v2  ;;  %v2008_v30 = vmax.f32 %v1935_v47, 0.0 }
 0x213   : > { %v1829_v45 = vpop.f32.mrf.mxu0  ;;  %2486 = vmatmul.mubr.bf16.gmra.mxu1 %v2055_v37 }
 0x214   : > { %v1939_v23 = vadd.f32 %v1938_v44, %v1826_v39  ;;  %v1942_v0 = vpop.f32.mrf.mxu1  ;;  %v2011_v19 = vmax.f32 %v1937_v53, 0.0  ;;  %v1830_v48 = vadd.f32 %v1829_v45, %v3764_v20 }
 0x215   : > { %v1831_v28 = vpop.f32.mrf.mxu0 }
 0x216   : > { %v2012_v33 = vmax.f32 %v1939_v23, 0.0  ;;  %v1832_v41 = vadd.f32 %v1831_v28, %v3759_v8  ;;  %v1944_v42 = vpop.f32.mrf.mxu1  ;;  %v2059_v16 = vpack.c.bf16 %v2011_v19, %v2007_v43  ;;  %v1943_v32 = vadd.f32 %v1942_v0, %v1830_v48 }
 0x217   : > { %v1833_v11 = vpop.f32.mrf.mxu0 }
 0x218   : > { %v2060_v12 = vpack.c.bf16 %v2012_v33, %v2008_v30  ;;  %v1834_v49 = vadd.f32 %v1833_v11, %v3764_v20  ;;  %v1946_v15 = vpop.f32.mrf.mxu1  ;;  %v1945_v61 = vadd.f32 %v1944_v42, %v1832_v41  ;;  %v2015_v13 = vmax.f32 %v1943_v32, 0.0 }
 0x219   : > { %v1835_v55 = vpop.f32.mrf.mxu0 }
 0x21a   : > { %v1947_v57 = vadd.f32 %v1946_v15, %v1834_v49  ;;  %v1836_v58 = vadd.f32 %v1835_v55, %v3759_v8  ;;  %v1948_v31 = vpop.f32.mrf.mxu1  ;;  %2493 = vmatprep.mubr.bf16.mxu1 %v2060_v12  ;;  %v2016_v51 = vmax.f32 %v1945_v61, 0.0 }
 0x21b   : > { %v1839_v34 = vpop.f32.mrf.mxu0  ;;  %2494 = vmatmul.mubr.bf16.gmra.mxu1 %v2059_v16 }
 0x21c   : > { %v1949_v35 = vadd.f32 %v1948_v31, %v1836_v58  ;;  %v1952_v21 = vpop.f32.mrf.mxu1  ;;  %v2019_v22 = vmax.f32 %v1947_v57, 0.0  ;;  %v1840_v17 = vadd.f32 %v1839_v34, %v3764_v20 }
 0x21d   : > { %v1841_v50 = vpop.f32.mrf.mxu0 }
 0x21e   : > { %v2020_v24 = vmax.f32 %v1949_v35, 0.0  ;;  %v1842_v25 = vadd.f32 %v1841_v50, %v3759_v8  ;;  %v1954_v10 = vpop.f32.mrf.mxu1  ;;  %v2063_v9 = vpack.c.bf16 %v2019_v22, %v2015_v13  ;;  %v1953_v62 = vadd.f32 %v1952_v21, %v1840_v17 }
 0x21f   : > { %v1843_v18 = vpop.f32.mrf.mxu0 }
 0x220   : > { %v2064_v7 = vpack.c.bf16 %v2020_v24, %v2016_v51  ;;  %v1844_v14 = vadd.f32 %v1843_v18, %v3764_v20  ;;  %v1956_v56 = vpop.f32.mrf.mxu1  ;;  %v1955_v29 = vadd.f32 %v1954_v10, %v1842_v25  ;;  %v2023_v3 = vmax.f32 %v1953_v62, 0.0 }
 0x221   : > { %v1845_v26 = vpop.f32.mrf.mxu0 }
 0x222   : > { %v1957_v54 = vadd.f32 %v1956_v56, %v1844_v14  ;;  %v1846_v52 = vadd.f32 %v1845_v26, %v3759_v8  ;;  %v1958_v60 = vpop.f32.mrf.mxu1  ;;  %2501 = vmatprep.mubr.bf16.mxu1 %v2064_v7  ;;  %v2024_v36 = vmax.f32 %v1955_v29, 0.0 }
 0x223   : > { %v1849_v63 = vpop.f32.mrf.mxu0  ;;  %2502 = vmatmul.mubr.bf16.gmra.mxu1 %v2063_v9 }
 0x224   : > { %v1959_v1 = vadd.f32 %v1958_v60, %v1846_v52  ;;  %v1962_v38 = vpop.f32.mrf.mxu1  ;;  %v2027_v46 = vmax.f32 %v1957_v54, 0.0  ;;  %v1850_v4 = vadd.f32 %v1849_v63, %v3764_v20 }
 0x225   : > { %v1851_v59 = vpop.f32.mrf.mxu0 }
 0x226   : > { %v2028_v40 = vmax.f32 %v1959_v1, 0.0  ;;  %v1852_v27 = vadd.f32 %v1851_v59, %v3759_v8  ;;  %v1964_v2 = vpop.f32.mrf.mxu1  ;;  %v2067_v39 = vpack.c.bf16 %v2027_v46, %v2023_v3  ;;  %v1963_v19 = vadd.f32 %v1962_v38, %v1850_v4 }
 0x227   : > { %v1853_v37 = vpop.f32.mrf.mxu0 }
 0x228   : > { %v2068_v5 = vpack.c.bf16 %v2028_v40, %v2024_v36  ;;  %v1854_v47 = vadd.f32 %v1853_v37, %v3764_v20  ;;  %v1966_v53 = vpop.f32.mrf.mxu1  ;;  %v1965_v6 = vadd.f32 %v1964_v2, %v1852_v27  ;;  %v2031_v49 = vmax.f32 %v1963_v19, 0.0  ;;  %v3803_v36 = vld [vmem:[%s3873_s6] ss:$0 sm:$0xff] }
 0x229   : > { %v1855_v44 = vpop.f32.mrf.mxu0 }
 0x22a   : > { %v1967_v45 = vadd.f32 %v1966_v53, %v1854_v47  ;;  %v1856_v23 = vadd.f32 %v1855_v44, %v3759_v8  ;;  %v1968_v0 = vpop.f32.mrf.mxu1  ;;  %2509 = vmatprep.mubr.bf16.mxu1 %v2068_v5  ;;  %v2032_v43 = vmax.f32 %v1965_v6, 0.0 }
 0x22b   : > { %v1859_v28 = vpop.f32.mrf.mxu0  ;;  %2510 = vmatmul.mubr.bf16.gmra.mxu1 %v2067_v39 }
 0x22c   : > { %v1969_v30 = vadd.f32 %v1968_v0, %v1856_v23  ;;  %v1972_v33 = vpop.f32.mrf.mxu1  ;;  %v2035_v41 = vmax.f32 %v1967_v45, 0.0  ;;  %v1860_v15 = vadd.f32 %v1859_v28, %v3764_v20 }
 0x22d   : > { %v1861_v42 = vpop.f32.mrf.mxu0 }
 0x22e   : > { %v2036_v48 = vmax.f32 %v1969_v30, 0.0  ;;  %v1862_v11 = vadd.f32 %v1861_v42, %v3759_v8  ;;  %v1974_v12 = vpop.f32.mrf.mxu1  ;;  %v2071_v58 = vpack.c.bf16 %v2035_v41, %v2031_v49  ;;  %v1973_v21 = vadd.f32 %v1972_v33, %v1860_v15 }
 0x22f   : > { %v1863_v16 = vpop.f32.mrf.mxu0 }
 0x230   : > { %v2072_v55 = vpack.c.bf16 %v2036_v48, %v2032_v43  ;;  %v1864_v61 = vadd.f32 %v1863_v16, %v3764_v20  ;;  %v1976_v57 = vpop.f32.mrf.mxu1  ;;  %v1975_v32 = vadd.f32 %v1974_v12, %v1862_v11  ;;  %v2039_v10 = vmax.f32 %v1973_v21, 0.0 }
 0x231   : > { %v1865_v31 = vpop.f32.mrf.mxu0 }
 0x232   : > { %v1977_v34 = vadd.f32 %v1976_v57, %v1864_v61  ;;  %v1866_v35 = vadd.f32 %v1865_v31, %v3759_v8  ;;  %2517 = vmatprep.mubr.bf16.mxu1 %v2072_v55  ;;  %v1978_v22 = vpop.f32.mrf.mxu1  ;;  %v2040_v24 = vmax.f32 %v1975_v32, 0.0 }
 0x233   : > { %2518 = vmatmul.mubr.bf16.gmra.mxu1 %v2071_v58 }
 0x234   : > { %v1979_v50 = vadd.f32 %v1978_v22, %v1866_v35  ;;  %v2043_v51 = vmax.f32 %v1977_v34, 0.0 }
 0x236   : > { %v2044_v25 = vmax.f32 %v1979_v50, 0.0  ;;  %v2075_v17 = vpack.c.bf16 %v2043_v51, %v2039_v10 }
 0x238   : > { %v2076_v13 = vpack.c.bf16 %v2044_v25, %v2040_v24 }
 0x23a   : > { %2525 = vmatprep.mubr.bf16.mxu1 %v2076_v13 }
 0x23b   : > { %2526 = vmatmul.mubr.bf16.gmra.mxu1 %v2075_v17 }
 0x283   : > { %v2833_v20 = vpop.f32.mrf.mxu0 }
 0x285   : > { %v2834_v18 = vpop.f32.mrf.mxu0 }
 0x286   : > { %v2835_v59 = vadd.f32 %v2834_v18, %v2833_v20 }
 0x287   : > { %v2836_v7 = vpop.f32.mrf.mxu0 }
 0x288   : > { %v2375_v3 = vadd.f32 %v2835_v59, %v3803_v36 }
 0x289   : > { %v2837_v14 = vpop.f32.mrf.mxu0 }
 0x28a   : > { %v2838_v4 = vadd.f32 %v2837_v14, %v2836_v7 }
 0x28b   : > { %v2839_v56 = vpop.f32.mrf.mxu0 }
 0x28c   : > { %v2378_v44 = vadd.f32 %v2838_v4, %v3803_v36 }
 0x28d   : > { %v2840_v9 = vpop.f32.mrf.mxu0 }
 0x28e   : > { %v2841_v6 = vadd.f32 %v2840_v9, %v2839_v56 }
 0x28f   : > { %v2842_v8 = vpop.f32.mrf.mxu0 }
 0x290   : > { %v2383_v30 = vadd.f32 %v2841_v6, %v3803_v36 }
 0x291   : > { %v2843_v26 = vpop.f32.mrf.mxu0 }
 0x292   : > { %v2844_v33 = vadd.f32 %v2843_v26, %v2842_v8 }
 0x293   : > { %v2845_v29 = vpop.f32.mrf.mxu0 }
 0x294   : > { %v2386_v12 = vadd.f32 %v2844_v33, %v3803_v36 }
 0x295   : > { %v2846_v54 = vpop.f32.mrf.mxu0 }
 0x296   : > { %v2847_v49 = vadd.f32 %v2846_v54, %v2845_v29 }
 0x297   : > { %v2848_v52 = vpop.f32.mrf.mxu0 }
 0x298   : > { %v2391_v58 = vadd.f32 %v2847_v49, %v3803_v36 }
 0x299   : > { %v2849_v60 = vpop.f32.mrf.mxu0 }
 0x29a   : > { %v2850_v31 = vadd.f32 %v2849_v60, %v2848_v52 }
 0x29b   : > { %v2851_v62 = vpop.f32.mrf.mxu0 }
 0x29c   : > { %v2394_v50 = vadd.f32 %v2850_v31, %v3803_v36 }
 0x29d   : > { %v2852_v63 = vpop.f32.mrf.mxu0 }
 0x29e   : > { %v2853_v51 = vadd.f32 %v2852_v63, %v2851_v62 }
 0x29f   : > { %v2854_v1 = vpop.f32.mrf.mxu0 }
 0x2a0   : > { %v2399_v20 = vadd.f32 %v2853_v51, %v3803_v36 }
 0x2a1   : > { %v2855_v38 = vpop.f32.mrf.mxu0 }
 0x2a2   : > { %v2856_v18 = vadd.f32 %v2855_v38, %v2854_v1 }
 0x2a3   : > { %v3798_v46 = vpop.f32.mrf.mxu0 }
 0x2a4   : > { %v2402_v26 = vadd.f32 %v2856_v18, %v3803_v36 }
 0x2a5   : > { %v2858_v40 = vpop.f32.mrf.mxu0 }
 0x2a6   : > { %v2859_v29 = vadd.f32 %v2858_v40, %v3798_v46 }
 0x2a7   : > { %v3806_v5 = vpop.f32.mrf.mxu0 }
 0x2a8   : > { %v2407_v1 = vadd.f32 %v2859_v29, %v3803_v36 }
 0x2a9   : > { %v2861_v23 = vpop.f32.mrf.mxu0 }
 0x2aa   : > { %v2862_v38 = vadd.f32 %v2861_v23, %v3806_v5 }
 0x2ab   : > { %v2863_v42 = vpop.f32.mrf.mxu0 }
 0x2ac   : > { %v2410_v40 = vadd.f32 %v2862_v38, %v3803_v36 }
 0x2ad   : > { %v2864_v16 = vpop.f32.mrf.mxu0 }
 0x2ae   : > { %v2865_v4 = vadd.f32 %v2864_v16, %v2863_v42 }
 0x2af   : > { %v2866_v34 = vpop.f32.mrf.mxu0 }
 0x2b0   : > { %v2415_v5 = vadd.f32 %v2865_v4, %v3803_v36 }
 0x2b1   : > { %v2867_v25 = vpop.f32.mrf.mxu0 }
 0x2b2   : > { %v2868_v6 = vadd.f32 %v2867_v25, %v2866_v34 }
 0x2b3   : > { %v2869_v14 = vpop.f32.mrf.mxu0 }
 0x2b5   : > { %v2870_v52 = vpop.f32.mrf.mxu0 }
 0x2b6   : > { %v2871_v33 = vadd.f32 %v2870_v52, %v2869_v14 }
 0x2c3   : > { %v2897_v27 = vpop.f32.mrf.mxu1 }
 0x2c5   : > { %v2898_v2 = vpop.f32.mrf.mxu1 }
 0x2c6   : > { %v2899_v37 = vadd.f32 %v2898_v2, %v2897_v27  ;;  %v2872_v27 = vpop.f32.mrf.mxu0 }
 0x2c7   : > { %v2900_v47 = vpop.f32.mrf.mxu1 }
 0x2c8   : > { %v2472_v53 = vadd.f32 %v2899_v37, %v2375_v3 }
 0x2c9   : > { %v2901_v39 = vpop.f32.mrf.mxu1 }
 0x2ca   : > { %2535 = vst.msk [vmem:[%s3813_s26] sm:$0xff] %vm2534_vm1, %v2472_v53  ;;  %v2902_v45 = vadd.f32 %v2901_v39, %v2900_v47  ;;  %v2873_v47 = vpop.f32.mrf.mxu0 }
 0x2cb   : > { %v2903_v0 = vpop.f32.mrf.mxu1  ;;  %v2874_v49 = vadd.f32 %v2873_v47, %v2872_v27 }
 0x2cc   : > { %v2475_v19 = vadd.f32 %v2902_v45, %v2378_v44  ;;  %v2875_v23 = vpop.f32.mrf.mxu0 }
 0x2cd   : > { %v2904_v28 = vpop.f32.mrf.mxu1 }
 0x2ce   : > { %2536 = vst.msk [vmem:[%s3813_s26 + $0x8] sm:$0xff] %vm2534_vm1, %v2475_v19  ;;  %v2905_v41 = vadd.f32 %v2904_v28, %v2903_v0  ;;  %v2876_v42 = vpop.f32.mrf.mxu0 }
 0x2cf   : > { %v2906_v43 = vpop.f32.mrf.mxu1  ;;  %v2877_v31 = vadd.f32 %v2876_v42, %v2875_v23 }
 0x2d0   : > { %v2480_v48 = vadd.f32 %v2905_v41, %v2383_v30  ;;  %v2418_v30 = vadd.f32 %v2868_v6, %v3803_v36  ;;  %v2878_v16 = vpop.f32.mrf.mxu0 }
 0x2d1   : > { %v2907_v11 = vpop.f32.mrf.mxu1 }
 0x2d2   : > { %2537 = vst.msk [vmem:[%s3813_s26 + $0x10] sm:$0xff] %vm2534_vm1, %v2480_v48  ;;  %v2908_v15 = vadd.f32 %v2907_v11, %v2906_v43  ;;  %v2879_v34 = vpop.f32.mrf.mxu0 }
 0x2d3   : > { %v2909_v55 = vpop.f32.mrf.mxu1  ;;  %v2880_v51 = vadd.f32 %v2879_v34, %v2878_v16 }
 0x2d4   : > { %v2483_v61 = vadd.f32 %v2908_v15, %v2386_v12  ;;  %v2423_v12 = vadd.f32 %v2871_v33, %v3803_v36 }
 0x2d5   : > { %v2910_v57 = vpop.f32.mrf.mxu1 }
 0x2d6   : > { %2538 = vst.msk [vmem:[%s3813_s26 + $0x18] sm:$0xff] %vm2534_vm1, %v2483_v61  ;;  %v2911_v32 = vadd.f32 %v2910_v57, %v2909_v55 }
 0x2d7   : > { %v2912_v35 = vpop.f32.mrf.mxu1 }
 0x2d8   : > { %v2488_v21 = vadd.f32 %v2911_v32, %v2391_v58  ;;  %v2426_v58 = vadd.f32 %v2874_v49, %v3803_v36 }
 0x2d9   : > { %v2913_v22 = vpop.f32.mrf.mxu1 }
 0x2da   : > { %2539 = vst.msk [vmem:[%s3813_s26 + $0x20] sm:$0xff] %vm2534_vm1, %v2488_v21  ;;  %v2914_v24 = vadd.f32 %v2913_v22, %v2912_v35 }
 0x2db   : > { %v2915_v10 = vpop.f32.mrf.mxu1 }
 0x2dc   : > { %v2491_v13 = vadd.f32 %v2914_v24, %v2394_v50  ;;  %v2431_v50 = vadd.f32 %v2877_v31, %v3803_v36 }
 0x2dd   : > { %v2916_v17 = vpop.f32.mrf.mxu1 }
 0x2de   : > { %2540 = vst.msk [vmem:[%s3813_s26 + $0x28] sm:$0xff] %vm2534_vm1, %v2491_v13  ;;  %v2917_v7 = vadd.f32 %v2916_v17, %v2915_v10  ;;  %v2434_v17 = vadd.f32 %v2880_v51, %v3803_v36 }
 0x2df   : > { %v2918_v56 = vpop.f32.mrf.mxu1 }
 0x2e0   : > { %v2496_v9 = vadd.f32 %v2917_v7, %v2399_v20 }
 0x2e1   : > { %v2919_v8 = vpop.f32.mrf.mxu1 }
 0x2e2   : > { %2541 = vst.msk [vmem:[%s3813_s26 + $0x30] sm:$0xff] %vm2534_vm1, %v2496_v9  ;;  %v2920_v54 = vadd.f32 %v2919_v8, %v2918_v56 }
 0x2e3   : > { %v2921_v60 = vpop.f32.mrf.mxu1 }
 0x2e4   : > { %v2499_v62 = vadd.f32 %v2920_v54, %v2402_v26 }
 0x2e5   : > { %v2922_v63 = vpop.f32.mrf.mxu1 }
 0x2e6   : > { %2542 = vst.msk [vmem:[%s3813_s26 + $0x38] sm:$0xff] %vm2534_vm1, %v2499_v62  ;;  %v2923_v59 = vadd.f32 %v2922_v63, %v2921_v60 }
 0x2e7   : > { %v2924_v2 = vpop.f32.mrf.mxu1 }
 0x2e8   : > { %v2504_v3 = vadd.f32 %v2923_v59, %v2407_v1 }
 0x2e9   : > { %v2925_v46 = vpop.f32.mrf.mxu1 }
 0x2ea   : > { %2543 = vst.msk [vmem:[%s3813_s26 + $0x40] sm:$0xff] %vm2534_vm1, %v2504_v3  ;;  %v2926_v37 = vadd.f32 %v2925_v46, %v2924_v2 }
 0x2eb   : > { %v2927_v53 = vpop.f32.mrf.mxu1 }
 0x2ec   : > { %v2507_v39 = vadd.f32 %v2926_v37, %v2410_v40 }
 0x2ed   : > { %v2928_v44 = vpop.f32.mrf.mxu1 }
 0x2ee   : > { %2544 = vst.msk [vmem:[%s3813_s26 + $0x48] sm:$0xff] %vm2534_vm1, %v2507_v39  ;;  %v2929_v45 = vadd.f32 %v2928_v44, %v2927_v53 }
 0x2ef   : > { %v2930_v0 = vpop.f32.mrf.mxu1 }
 0x2f0   : > { %v2512_v19 = vadd.f32 %v2929_v45, %v2415_v5 }
 0x2f1   : > { %v2931_v28 = vpop.f32.mrf.mxu1 }
 0x2f2   : > { %2545 = vst.msk [vmem:[%s3813_s26 + $0x50] sm:$0xff] %vm2534_vm1, %v2512_v19  ;;  %v2932_v41 = vadd.f32 %v2931_v28, %v2930_v0 }
 0x2f3   : > { %v2933_v43 = vpop.f32.mrf.mxu1 }
 0x2f4   : > { %v2515_v48 = vadd.f32 %v2932_v41, %v2418_v30 }
 0x2f5   : > { %v2934_v11 = vpop.f32.mrf.mxu1 }
 0x2f6   : > { %2546 = vst.msk [vmem:[%s3813_s26 + $0x58] sm:$0xff] %vm2534_vm1, %v2515_v48  ;;  %v2935_v15 = vadd.f32 %v2934_v11, %v2933_v43 }
 0x2f7   : > { %v2936_v55 = vpop.f32.mrf.mxu1 }
 0x2f8   : > { %v2520_v61 = vadd.f32 %v2935_v15, %v2423_v12 }
 0x2f9   : > { %v2937_v57 = vpop.f32.mrf.mxu1 }
 0x2fa   : > { %2547 = vst.msk [vmem:[%s3813_s26 + $0x60] sm:$0xff] %vm2534_vm1, %v2520_v61  ;;  %v2938_v32 = vadd.f32 %v2937_v57, %v2936_v55 }
 0x2fb   : > { %v2939_v35 = vpop.f32.mrf.mxu1 }
 0x2fc   : > { %v2523_v21 = vadd.f32 %v2938_v32, %v2426_v58 }
 0x2fd   : > { %v2940_v22 = vpop.f32.mrf.mxu1 }
 0x2fe   : > { %2548 = vst.msk [vmem:[%s3813_s26 + $0x68] sm:$0xff] %vm2534_vm1, %v2523_v21  ;;  %v2941_v24 = vadd.f32 %v2940_v22, %v2939_v35 }
 0x2ff   : > { %v2942_v25 = vpop.f32.mrf.mxu1 }
 0x300   : > { %v2528_v10 = vadd.f32 %v2941_v24, %v2431_v50 }
 0x301   : > { %v2943_v13 = vpop.f32.mrf.mxu1 }
 0x302   : > { %2549 = vst.msk [vmem:[%s3813_s26 + $0x70] sm:$0xff] %vm2534_vm1, %v2528_v10  ;;  %v2944_v20 = vadd.f32 %v2943_v13, %v2942_v25 }
 0x304   : > { %v2531_v18 = vadd.f32 %v2944_v20, %v2434_v17 }
 0x306   : > { %2550 = vst.msk [vmem:[%s3813_s26 + $0x78] sm:$0xff] %vm2534_vm1, %v2531_v18 }
 0x307 PF: > { %s18_s24 = sadd.s32 1, %s3239_s24  }
 0x308   : > { %p15_p1 = scmp.ge.s32.totalorder %s18_s24, 4  }
 0x30a   :  { %17 = sbr.rel (!%p15_p1) target bundleno = 1 (0x1), region = 83 }
 0x30f   :  { %2573 = vsyncpa [#allocation3], 1 }
 0x310   :  { %2575 = vsyncpa [#allocation3 + $0x1], 1 }

</bundles_post_ra>
